<compile_context>
chip_gen: v7x
topology: tpu7x:2x2x1
jax: 0.10.0
libtpu: 0.0.40
codegen_flags: <defaults>
</compile_context>

<pallas_src>
import functools

import numpy as np
import jax
import jax.numpy as jnp
from jax import lax
from jax.experimental import pallas as pl
from jax.experimental.pallas import tpu as pltpu


def _full_spec(shape):
    nd = len(shape)
    return pl.BlockSpec(shape, lambda i, _nd=nd: (0,) * _nd)


# --------------------------- fused Pallas kernel -----------------------------

def _conv_block_kernel(x_ref, masks1_ref, masks2_ref, w1_ref, g1_ref, b1_ref,
                       w2_ref, g2_ref, b2_ref,
                       o_ref, pad1_ref, pad2_ref, p1_ref, p2_ref,
                       *, W, eps, slope):
    """Fused [conv3x3 -> BN -> LeakyReLU] x 2 on (N, C, H*W) layout."""
    N, Cin, HW = x_ref.shape
    C1 = w1_ref.shape[0]
    C2 = w2_ref.shape[0]
    Wp = W + 1                       # per-side flat zero pad (covers dy,dx in {-1,0,1})

    # Zero only the pad strips; the interior is fully overwritten per image below.
    pad1_ref[:, 0:Wp] = jnp.zeros((Cin, Wp), jnp.float32)
    pad1_ref[:, Wp + HW:Wp + HW + Wp] = jnp.zeros((Cin, Wp), jnp.float32)
    pad2_ref[:, 0:Wp] = jnp.zeros((C1, Wp), jnp.float32)
    pad2_ref[:, Wp + HW:Wp + HW + Wp] = jnp.zeros((C1, Wp), jnp.float32)

    def build_patches(src, pad_ref, patches_ref, C, col_off, m_left, m_right):
        # src: (C, HW) value.  Writes this image's (9*C, HW) tap slabs into the
        # 128-aligned column block [col_off, col_off + HW) of the batched patch matrix.
        pad_ref[:, Wp:Wp + HW] = src
        for ky in range(3):
            for kx in range(3):
                t = ky * 3 + kx
                s = ky * W + kx                      # static lane offset of this tap
                slab = pad_ref[:, s:s + HW]
                if kx == 0:
                    slab = slab * m_left             # zero columns where x == 0
                elif kx == 2:
                    slab = slab * m_right            # zero columns where x == W - 1
                patches_ref[t * C:(t + 1) * C, col_off:col_off + HW] = slab

    # ---- stage 1: batched im2col for all images + ONE matmul --------------------
    m_l1 = masks1_ref[0]                 # (Cin, HW), pre-broadcast constants
    m_r1 = masks1_ref[1]
    for n in range(N):
        build_patches(x_ref[n], pad1_ref, p1_ref, Cin, n * HW, m_l1, m_r1)
    y1 = jnp.dot(w1_ref[...], p1_ref[...],
                 preferred_element_type=jnp.float32)          # (C1, N*HW)

    # BN1 (training-mode batch stats, two-pass/centered variance) + LeakyReLU.
    mean1 = jnp.mean(y1, axis=1, keepdims=True)
    d1 = y1 - mean1
    var1 = jnp.mean(d1 * d1, axis=1, keepdims=True)
    sc1 = g1_ref[...] * lax.rsqrt(var1 + eps)
    a1 = d1 * sc1 + b1_ref[...]
    a1 = jnp.where(a1 >= 0, a1, slope * a1)                   # (C1, N*HW)

    # ---- stage 2: batched im2col on the resident activations + ONE matmul -------
    m_l2 = masks2_ref[0]                 # (C1, HW)
    m_r2 = masks2_ref[1]
    for n in range(N):
        build_patches(a1[:, n * HW:(n + 1) * HW], pad2_ref, p2_ref, C1,
                      n * HW, m_l2, m_r2)
    y2 = jnp.dot(w2_ref[...], p2_ref[...],
                 preferred_element_type=jnp.float32)          # (C2, N*HW)

    mean2 = jnp.mean(y2, axis=1, keepdims=True)
    d2 = y2 - mean2
    var2 = jnp.mean(d2 * d2, axis=1, keepdims=True)
    sc2 = g2_ref[...] * lax.rsqrt(var2 + eps)
    a2 = d2 * sc2 + b2_ref[...]
    a2 = jnp.where(a2 >= 0, a2, slope * a2)                   # (C2, N*HW)

    # ---- write lane-dense (N, C2, HW) output (256-aligned column slices) --------
    for n in range(N):
        o_ref[n] = a2[:, n * HW:(n + 1) * HW]


# --------------------------- wrapper ------------------------------------------

def convolution_block(x_nchw, params, *, eps=1e-5, slope=0.01):
    """Forward pass of ConvolutionBlock (training-mode BatchNorm). NCHW in/out."""
    N, Cin, H, W = x_nchw.shape
    C1 = params["w1"].shape[0]
    C2 = params["w2"].shape[0]
    HW = H * W
    L = HW + 2 * (W + 1)

    # Lane-dense layout: minor dim = H*W. These reshapes are free (layout-preserving).
    x2 = x_nchw.reshape(N, Cin, HW).astype(jnp.float32)
    # Weight (O, I, 3, 3) -> (O, 9*I) with k = (ky*3+kx)*I + ci (matches patch order).
    w1m = jnp.transpose(params["w1"], (0, 2, 3, 1)).reshape(C1, 9 * Cin).astype(jnp.float32)
    w2m = jnp.transpose(params["w2"], (0, 2, 3, 1)).reshape(C2, 9 * C1).astype(jnp.float32)
    g1 = params["g1"].reshape(C1, 1).astype(jnp.float32)
    b1 = params["b1"].reshape(C1, 1).astype(jnp.float32)
    g2 = params["g2"].reshape(C2, 1).astype(jnp.float32)
    b2 = params["b2"].reshape(C2, 1).astype(jnp.float32)

    # Static column masks (trace-time constants), pre-broadcast to (C, HW) so the
    # kernel never re-emits broadcast_in_dim inside the tap loops.
    col = np.arange(HW, dtype=np.int64) % W
    m_l = (col != 0).astype(np.float32)
    m_r = (col != W - 1).astype(np.float32)
    masks1 = jnp.asarray(np.stack([np.broadcast_to(m_l, (Cin, HW)),
                                   np.broadcast_to(m_r, (Cin, HW))]))
    masks2 = jnp.asarray(np.stack([np.broadcast_to(m_l, (C1, HW)),
                                   np.broadcast_to(m_r, (C1, HW))]))

    flops = 2 * N * HW * 9 * (Cin * C1 + C1 * C2)
    bytes_accessed = 4 * (x2.size + N * C2 * HW + w1m.size + w2m.size
                          + masks1.size + masks2.size + 2 * (C1 + C2))

    kern = functools.partial(_conv_block_kernel, W=W, eps=eps, slope=slope)
    out = pl.pallas_call(
        kern,
        out_shape=jax.ShapeDtypeStruct((N, C2, HW), jnp.float32),
        grid=(1,),
        in_specs=[_full_spec(a.shape)
                  for a in (x2, masks1, masks2, w1m, g1, b1, w2m, g2, b2)],
        out_specs=_full_spec((N, C2, HW)),
        scratch_shapes=[
            pltpu.VMEM((Cin, L), jnp.float32),        # zero-padded flat image, stage 1
            pltpu.VMEM((C1, L), jnp.float32),         # zero-padded flat image, stage 2
            pltpu.VMEM((9 * Cin, N * HW), jnp.float32),  # batched im2col patches, stage 1
            pltpu.VMEM((9 * C1, N * HW), jnp.float32),   # batched im2col patches, stage 2
        ],
        compiler_params=pltpu.CompilerParams(dimension_semantics=("arbitrary",)),
        cost_estimate=pl.CostEstimate(flops=flops, transcendentals=0,
                                      bytes_accessed=bytes_accessed),
    )(x2, masks1, masks2, w1m, g1, b1, w2m, g2, b2)
    return out.reshape(N, C2, H, W)                  # free reshape back to NCHW


# --------------------------- pure-JAX reference --------------------------------

def convolution_block_ref(x, params, eps=1e-5, slope=0.01):
    def stage(h, w, g, b):
        y = lax.conv_general_dilated(
            h, w, (1, 1), "SAME",
            dimension_numbers=("NCHW", "OIHW", "NCHW"),
            precision=lax.Precision.HIGHEST)
        m = jnp.mean(y, axis=(0, 2, 3), keepdims=True)
        v = jnp.mean((y - m) ** 2, axis=(0, 2, 3), keepdims=True)
        y = (y - m) * lax.rsqrt(v + eps)
        y = y * g.reshape(1, -1, 1, 1) + b.reshape(1, -1, 1, 1)
        return jnp.where(y >= 0, y, slope * y)

    h = stage(x, params["w1"], params["g1"], params["b1"])
    return stage(h, params["w2"], params["g2"], params["b2"])


# --------------------------- main -----------------------------------------------

if __name__ == "__main__":
    key = jax.random.PRNGKey(0)
    ks = jax.random.split(key, 8)

    in_channels, out_channels = 4, 8
    N, H, W = 2, 16, 16

    x = jax.random.normal(ks[0], (N, in_channels, H, W), jnp.float32)
    params = {
        # Conv2d(in -> out, 3x3, padding='same', bias=False)
        "w1": 0.2 * jax.random.normal(ks[1], (out_channels, in_channels, 3, 3), jnp.float32),
        "g1": 1.0 + 0.1 * jax.random.normal(ks[2], (out_channels,), jnp.float32),
        "b1": 0.1 * jax.random.normal(ks[3], (out_channels,), jnp.float32),
        # Conv2d(out -> out, 3x3, padding='same', bias=False)
        "w2": 0.2 * jax.random.normal(ks[4], (out_channels, out_channels, 3, 3), jnp.float32),
        "g2": 1.0 + 0.1 * jax.random.normal(ks[5], (out_channels,), jnp.float32),
        "b2": 0.1 * jax.random.normal(ks[6], (out_channels,), jnp.float32),
    }

    out = jax.jit(convolution_block)(x, params)
    out = jax.block_until_ready(out)

    ref = convolution_block_ref(x, params)
    assert out.shape == (N, out_channels, H, W), out.shape
    err = float(jnp.max(jnp.abs(out - ref)))
    assert err < 2e-2, err

    print("KERNEL_OK")
</pallas_src>

<mosaic_0001>
module attributes {stable_mosaic.version = 11 : i64} {
  func.func @_conv_block_kernel(%arg0: i32, %arg1: memref<2x4x256xf32, #tpu.memory_space<vmem>>, %arg2: memref<2x4x256xf32, #tpu.memory_space<vmem>>, %arg3: memref<2x8x256xf32, #tpu.memory_space<vmem>>, %arg4: memref<8x36xf32, #tpu.memory_space<vmem>>, %arg5: memref<8x1xf32, #tpu.memory_space<vmem>>, %arg6: memref<8x1xf32, #tpu.memory_space<vmem>>, %arg7: memref<8x72xf32, #tpu.memory_space<vmem>>, %arg8: memref<8x1xf32, #tpu.memory_space<vmem>>, %arg9: memref<8x1xf32, #tpu.memory_space<vmem>>, %arg10: memref<2x8x256xf32, #tpu.memory_space<vmem>>, %arg11: memref<4x290xf32, #tpu.memory_space<vmem>>, %arg12: memref<8x290xf32, #tpu.memory_space<vmem>>, %arg13: memref<36x512xf32, #tpu.memory_space<vmem>>, %arg14: memref<72x512xf32, #tpu.memory_space<vmem>>) attributes {dimension_semantics = [#tpu.dimension_semantics<arbitrary>], iteration_bounds = array<i64: 1>, scalar_prefetch = 0 : i64, scratch_operands = 4 : i64, tpu.core_type = #tpu.core_type<tc>, window_params = [{pipeline_mode = #tpu.pipeline_mode<synchronous>, transform_indices = @transform_0, window_bounds = array<i64: 2, 4, 256>}, {pipeline_mode = #tpu.pipeline_mode<synchronous>, transform_indices = @transform_1, window_bounds = array<i64: 2, 4, 256>}, {pipeline_mode = #tpu.pipeline_mode<synchronous>, transform_indices = @transform_2, window_bounds = array<i64: 2, 8, 256>}, {pipeline_mode = #tpu.pipeline_mode<synchronous>, transform_indices = @transform_3, window_bounds = array<i64: 8, 36>}, {pipeline_mode = #tpu.pipeline_mode<synchronous>, transform_indices = @transform_4, window_bounds = array<i64: 8, 1>}, {pipeline_mode = #tpu.pipeline_mode<synchronous>, transform_indices = @transform_5, window_bounds = array<i64: 8, 1>}, {pipeline_mode = #tpu.pipeline_mode<synchronous>, transform_indices = @transform_6, window_bounds = array<i64: 8, 72>}, {pipeline_mode = #tpu.pipeline_mode<synchronous>, transform_indices = @transform_7, window_bounds = array<i64: 8, 1>}, {pipeline_mode = #tpu.pipeline_mode<synchronous>, transform_indices = @transform_8, window_bounds = array<i64: 8, 1>}, {pipeline_mode = #tpu.pipeline_mode<synchronous>, transform_indices = @transform_9, window_bounds = array<i64: 2, 8, 256>}]} {
    %cst = arith.constant 0.000000e+00 : f32
    %0 = vector.broadcast %cst : f32 to vector<4x17xf32>
    %c0 = arith.constant 0 : index
    %c0_0 = arith.constant 0 : index
    %1 = vector.load %arg11[%c0, %c0_0] : memref<4x290xf32, #tpu.memory_space<vmem>>, vector<4x17xf32>
    tpu.vector_store %arg11[%c0, %c0_0], %0 {strides = array<i32>} : memref<4x290xf32, #tpu.memory_space<vmem>>, vector<4x17xf32>,
    %cst_1 = arith.constant 0.000000e+00 : f32
    %2 = vector.broadcast %cst_1 : f32 to vector<4x17xf32>
    %c0_2 = arith.constant 0 : index
    %c273 = arith.constant 273 : index
    %3 = vector.load %arg11[%c0_2, %c273] : memref<4x290xf32, #tpu.memory_space<vmem>>, vector<4x17xf32>
    tpu.vector_store %arg11[%c0_2, %c273], %2 {strides = array<i32>} : memref<4x290xf32, #tpu.memory_space<vmem>>, vector<4x17xf32>,
    %cst_3 = arith.constant 0.000000e+00 : f32
    %4 = vector.broadcast %cst_3 : f32 to vector<8x17xf32>
    %c0_4 = arith.constant 0 : index
    %c0_5 = arith.constant 0 : index
    %5 = vector.load %arg12[%c0_4, %c0_5] : memref<8x290xf32, #tpu.memory_space<vmem>>, vector<8x17xf32>
    tpu.vector_store %arg12[%c0_4, %c0_5], %4 {strides = array<i32>} : memref<8x290xf32, #tpu.memory_space<vmem>>, vector<8x17xf32>,
    %cst_6 = arith.constant 0.000000e+00 : f32
    %6 = vector.broadcast %cst_6 : f32 to vector<8x17xf32>
    %c0_7 = arith.constant 0 : index
    %c273_8 = arith.constant 273 : index
    %7 = vector.load %arg12[%c0_7, %c273_8] : memref<8x290xf32, #tpu.memory_space<vmem>>, vector<8x17xf32>
    tpu.vector_store %arg12[%c0_7, %c273_8], %6 {strides = array<i32>} : memref<8x290xf32, #tpu.memory_space<vmem>>, vector<8x17xf32>,
    %c0_9 = arith.constant 0 : index
    %c0_10 = arith.constant 0 : index
    %c0_11 = arith.constant 0 : index
    %8 = vector.load %arg2[%c0_9, %c0_10, %c0_11] : memref<2x4x256xf32, #tpu.memory_space<vmem>>, vector<1x4x256xf32>
    %9 = vector.shape_cast %8 : vector<1x4x256xf32> to vector<4x256xf32>
    %c1 = arith.constant 1 : index
    %c0_12 = arith.constant 0 : index
    %c0_13 = arith.constant 0 : index
    %10 = vector.load %arg2[%c1, %c0_12, %c0_13] : memref<2x4x256xf32, #tpu.memory_space<vmem>>, vector<1x4x256xf32>
    %11 = vector.shape_cast %10 : vector<1x4x256xf32> to vector<4x256xf32>
    %c0_14 = arith.constant 0 : index
    %c0_15 = arith.constant 0 : index
    %c0_16 = arith.constant 0 : index
    %12 = vector.load %arg1[%c0_14, %c0_15, %c0_16] : memref<2x4x256xf32, #tpu.memory_space<vmem>>, vector<1x4x256xf32>
    %13 = vector.shape_cast %12 : vector<1x4x256xf32> to vector<4x256xf32>
    %c0_17 = arith.constant 0 : index
    %c17 = arith.constant 17 : index
    %14 = vector.load %arg11[%c0_17, %c17] : memref<4x290xf32, #tpu.memory_space<vmem>>, vector<4x256xf32>
    tpu.vector_store %arg11[%c0_17, %c17], %13 {strides = array<i32>} : memref<4x290xf32, #tpu.memory_space<vmem>>, vector<4x256xf32>,
    %c0_18 = arith.constant 0 : index
    %c0_19 = arith.constant 0 : index
    %15 = vector.load %arg11[%c0_18, %c0_19] : memref<4x290xf32, #tpu.memory_space<vmem>>, vector<4x256xf32>
    %16 = arith.mulf %15, %9 : vector<4x256xf32>
    %c0_20 = arith.constant 0 : index
    %c0_21 = arith.constant 0 : index
    %17 = vector.load %arg13[%c0_20, %c0_21] : memref<36x512xf32, #tpu.memory_space<vmem>>, vector<4x256xf32>
    tpu.vector_store %arg13[%c0_20, %c0_21], %16 {strides = array<i32>} : memref<36x512xf32, #tpu.memory_space<vmem>>, vector<4x256xf32>,
    %c0_22 = arith.constant 0 : index
    %c1_23 = arith.constant 1 : index
    %18 = vector.load %arg11[%c0_22, %c1_23] : memref<4x290xf32, #tpu.memory_space<vmem>>, vector<4x256xf32>
    %c4 = arith.constant 4 : index
    %c0_24 = arith.constant 0 : index
    %19 = vector.load %arg13[%c4, %c0_24] : memref<36x512xf32, #tpu.memory_space<vmem>>, vector<4x256xf32>
    tpu.vector_store %arg13[%c4, %c0_24], %18 {strides = array<i32>} : memref<36x512xf32, #tpu.memory_space<vmem>>, vector<4x256xf32>,
    %c0_25 = arith.constant 0 : index
    %c2 = arith.constant 2 : index
    %20 = vector.load %arg11[%c0_25, %c2] : memref<4x290xf32, #tpu.memory_space<vmem>>, vector<4x256xf32>
    %21 = arith.mulf %20, %11 : vector<4x256xf32>
    %c8 = arith.constant 8 : index
    %c0_26 = arith.constant 0 : index
    %22 = vector.load %arg13[%c8, %c0_26] : memref<36x512xf32, #tpu.memory_space<vmem>>, vector<4x256xf32>
    tpu.vector_store %arg13[%c8, %c0_26], %21 {strides = array<i32>} : memref<36x512xf32, #tpu.memory_space<vmem>>, vector<4x256xf32>,
    %c0_27 = arith.constant 0 : index
    %c16 = arith.constant 16 : index
    %23 = vector.load %arg11[%c0_27, %c16] : memref<4x290xf32, #tpu.memory_space<vmem>>, vector<4x256xf32>
    %24 = arith.mulf %23, %9 : vector<4x256xf32>
    %c12 = arith.constant 12 : index
    %c0_28 = arith.constant 0 : index
    %25 = vector.load %arg13[%c12, %c0_28] : memref<36x512xf32, #tpu.memory_space<vmem>>, vector<4x256xf32>
    tpu.vector_store %arg13[%c12, %c0_28], %24 {strides = array<i32>} : memref<36x512xf32, #tpu.memory_space<vmem>>, vector<4x256xf32>,
    %c0_29 = arith.constant 0 : index
    %c17_30 = arith.constant 17 : index
    %26 = vector.load %arg11[%c0_29, %c17_30] : memref<4x290xf32, #tpu.memory_space<vmem>>, vector<4x256xf32>
    %c16_31 = arith.constant 16 : index
    %c0_32 = arith.constant 0 : index
    %27 = vector.load %arg13[%c16_31, %c0_32] : memref<36x512xf32, #tpu.memory_space<vmem>>, vector<4x256xf32>
    tpu.vector_store %arg13[%c16_31, %c0_32], %26 {strides = array<i32>} : memref<36x512xf32, #tpu.memory_space<vmem>>, vector<4x256xf32>,
    %c0_33 = arith.constant 0 : index
    %c18 = arith.constant 18 : index
    %28 = vector.load %arg11[%c0_33, %c18] : memref<4x290xf32, #tpu.memory_space<vmem>>, vector<4x256xf32>
    %29 = arith.mulf %28, %11 : vector<4x256xf32>
    %c20 = arith.constant 20 : index
    %c0_34 = arith.constant 0 : index
    %30 = vector.load %arg13[%c20, %c0_34] : memref<36x512xf32, #tpu.memory_space<vmem>>, vector<4x256xf32>
    tpu.vector_store %arg13[%c20, %c0_34], %29 {strides = array<i32>} : memref<36x512xf32, #tpu.memory_space<vmem>>, vector<4x256xf32>,
    %c0_35 = arith.constant 0 : index
    %c32 = arith.constant 32 : index
    %31 = vector.load %arg11[%c0_35, %c32] : memref<4x290xf32, #tpu.memory_space<vmem>>, vector<4x256xf32>
    %32 = arith.mulf %31, %9 : vector<4x256xf32>
    %c24 = arith.constant 24 : index
    %c0_36 = arith.constant 0 : index
    %33 = vector.load %arg13[%c24, %c0_36] : memref<36x512xf32, #tpu.memory_space<vmem>>, vector<4x256xf32>
    tpu.vector_store %arg13[%c24, %c0_36], %32 {strides = array<i32>} : memref<36x512xf32, #tpu.memory_space<vmem>>, vector<4x256xf32>,
    %c0_37 = arith.constant 0 : index
    %c33 = arith.constant 33 : index
    %34 = vector.load %arg11[%c0_37, %c33] : memref<4x290xf32, #tpu.memory_space<vmem>>, vector<4x256xf32>
    %c28 = arith.constant 28 : index
    %c0_38 = arith.constant 0 : index
    %35 = vector.load %arg13[%c28, %c0_38] : memref<36x512xf32, #tpu.memory_space<vmem>>, vector<4x256xf32>
    tpu.vector_store %arg13[%c28, %c0_38], %34 {strides = array<i32>} : memref<36x512xf32, #tpu.memory_space<vmem>>, vector<4x256xf32>,
    %c0_39 = arith.constant 0 : index
    %c34 = arith.constant 34 : index
    %36 = vector.load %arg11[%c0_39, %c34] : memref<4x290xf32, #tpu.memory_space<vmem>>, vector<4x256xf32>
    %37 = arith.mulf %36, %11 : vector<4x256xf32>
    %c32_40 = arith.constant 32 : index
    %c0_41 = arith.constant 0 : index
    %38 = vector.load %arg13[%c32_40, %c0_41] : memref<36x512xf32, #tpu.memory_space<vmem>>, vector<4x256xf32>
    tpu.vector_store %arg13[%c32_40, %c0_41], %37 {strides = array<i32>} : memref<36x512xf32, #tpu.memory_space<vmem>>, vector<4x256xf32>,
    %c1_42 = arith.constant 1 : index
    %c0_43 = arith.constant 0 : index
    %c0_44 = arith.constant 0 : index
    %39 = vector.load %arg1[%c1_42, %c0_43, %c0_44] : memref<2x4x256xf32, #tpu.memory_space<vmem>>, vector<1x4x256xf32>
    %40 = vector.shape_cast %39 : vector<1x4x256xf32> to vector<4x256xf32>
    %c0_45 = arith.constant 0 : index
    %c17_46 = arith.constant 17 : index
    %41 = vector.load %arg11[%c0_45, %c17_46] : memref<4x290xf32, #tpu.memory_space<vmem>>, vector<4x256xf32>
    tpu.vector_store %arg11[%c0_45, %c17_46], %40 {strides = array<i32>} : memref<4x290xf32, #tpu.memory_space<vmem>>, vector<4x256xf32>,
    %c0_47 = arith.constant 0 : index
    %c0_48 = arith.constant 0 : index
    %42 = vector.load %arg11[%c0_47, %c0_48] : memref<4x290xf32, #tpu.memory_space<vmem>>, vector<4x256xf32>
    %43 = arith.mulf %42, %9 : vector<4x256xf32>
    %c0_49 = arith.constant 0 : index
    %c256 = arith.constant 256 : index
    %44 = vector.load %arg13[%c0_49, %c256] : memref<36x512xf32, #tpu.memory_space<vmem>>, vector<4x256xf32>
    tpu.vector_store %arg13[%c0_49, %c256], %43 {strides = array<i32>} : memref<36x512xf32, #tpu.memory_space<vmem>>, vector<4x256xf32>,
    %c0_50 = arith.constant 0 : index
    %c1_51 = arith.constant 1 : index
    %45 = vector.load %arg11[%c0_50, %c1_51] : memref<4x290xf32, #tpu.memory_space<vmem>>, vector<4x256xf32>
    %c4_52 = arith.constant 4 : index
    %c256_53 = arith.constant 256 : index
    %46 = vector.load %arg13[%c4_52, %c256_53] : memref<36x512xf32, #tpu.memory_space<vmem>>, vector<4x256xf32>
    tpu.vector_store %arg13[%c4_52, %c256_53], %45 {strides = array<i32>} : memref<36x512xf32, #tpu.memory_space<vmem>>, vector<4x256xf32>,
    %c0_54 = arith.constant 0 : index
    %c2_55 = arith.constant 2 : index
    %47 = vector.load %arg11[%c0_54, %c2_55] : memref<4x290xf32, #tpu.memory_space<vmem>>, vector<4x256xf32>
    %48 = arith.mulf %47, %11 : vector<4x256xf32>
    %c8_56 = arith.constant 8 : index
    %c256_57 = arith.constant 256 : index
    %49 = vector.load %arg13[%c8_56, %c256_57] : memref<36x512xf32, #tpu.memory_space<vmem>>, vector<4x256xf32>
    tpu.vector_store %arg13[%c8_56, %c256_57], %48 {strides = array<i32>} : memref<36x512xf32, #tpu.memory_space<vmem>>, vector<4x256xf32>,
    %c0_58 = arith.constant 0 : index
    %c16_59 = arith.constant 16 : index
    %50 = vector.load %arg11[%c0_58, %c16_59] : memref<4x290xf32, #tpu.memory_space<vmem>>, vector<4x256xf32>
    %51 = arith.mulf %50, %9 : vector<4x256xf32>
    %c12_60 = arith.constant 12 : index
    %c256_61 = arith.constant 256 : index
    %52 = vector.load %arg13[%c12_60, %c256_61] : memref<36x512xf32, #tpu.memory_space<vmem>>, vector<4x256xf32>
    tpu.vector_store %arg13[%c12_60, %c256_61], %51 {strides = array<i32>} : memref<36x512xf32, #tpu.memory_space<vmem>>, vector<4x256xf32>,
    %c0_62 = arith.constant 0 : index
    %c17_63 = arith.constant 17 : index
    %53 = vector.load %arg11[%c0_62, %c17_63] : memref<4x290xf32, #tpu.memory_space<vmem>>, vector<4x256xf32>
    %c16_64 = arith.constant 16 : index
    %c256_65 = arith.constant 256 : index
    %54 = vector.load %arg13[%c16_64, %c256_65] : memref<36x512xf32, #tpu.memory_space<vmem>>, vector<4x256xf32>
    tpu.vector_store %arg13[%c16_64, %c256_65], %53 {strides = array<i32>} : memref<36x512xf32, #tpu.memory_space<vmem>>, vector<4x256xf32>,
    %c0_66 = arith.constant 0 : index
    %c18_67 = arith.constant 18 : index
    %55 = vector.load %arg11[%c0_66, %c18_67] : memref<4x290xf32, #tpu.memory_space<vmem>>, vector<4x256xf32>
    %56 = arith.mulf %55, %11 : vector<4x256xf32>
    %c20_68 = arith.constant 20 : index
    %c256_69 = arith.constant 256 : index
    %57 = vector.load %arg13[%c20_68, %c256_69] : memref<36x512xf32, #tpu.memory_space<vmem>>, vector<4x256xf32>
    tpu.vector_store %arg13[%c20_68, %c256_69], %56 {strides = array<i32>} : memref<36x512xf32, #tpu.memory_space<vmem>>, vector<4x256xf32>,
    %c0_70 = arith.constant 0 : index
    %c32_71 = arith.constant 32 : index
    %58 = vector.load %arg11[%c0_70, %c32_71] : memref<4x290xf32, #tpu.memory_space<vmem>>, vector<4x256xf32>
    %59 = arith.mulf %58, %9 : vector<4x256xf32>
    %c24_72 = arith.constant 24 : index
    %c256_73 = arith.constant 256 : index
    %60 = vector.load %arg13[%c24_72, %c256_73] : memref<36x512xf32, #tpu.memory_space<vmem>>, vector<4x256xf32>
    tpu.vector_store %arg13[%c24_72, %c256_73], %59 {strides = array<i32>} : memref<36x512xf32, #tpu.memory_space<vmem>>, vector<4x256xf32>,
    %c0_74 = arith.constant 0 : index
    %c33_75 = arith.constant 33 : index
    %61 = vector.load %arg11[%c0_74, %c33_75] : memref<4x290xf32, #tpu.memory_space<vmem>>, vector<4x256xf32>
    %c28_76 = arith.constant 28 : index
    %c256_77 = arith.constant 256 : index
    %62 = vector.load %arg13[%c28_76, %c256_77] : memref<36x512xf32, #tpu.memory_space<vmem>>, vector<4x256xf32>
    tpu.vector_store %arg13[%c28_76, %c256_77], %61 {strides = array<i32>} : memref<36x512xf32, #tpu.memory_space<vmem>>, vector<4x256xf32>,
    %c0_78 = arith.constant 0 : index
    %c34_79 = arith.constant 34 : index
    %63 = vector.load %arg11[%c0_78, %c34_79] : memref<4x290xf32, #tpu.memory_space<vmem>>, vector<4x256xf32>
    %64 = arith.mulf %63, %11 : vector<4x256xf32>
    %c32_80 = arith.constant 32 : index
    %c256_81 = arith.constant 256 : index
    %65 = vector.load %arg13[%c32_80, %c256_81] : memref<36x512xf32, #tpu.memory_space<vmem>>, vector<4x256xf32>
    tpu.vector_store %arg13[%c32_80, %c256_81], %64 {strides = array<i32>} : memref<36x512xf32, #tpu.memory_space<vmem>>, vector<4x256xf32>,
    %c0_82 = arith.constant 0 : index
    %c0_83 = arith.constant 0 : index
    %66 = vector.load %arg4[%c0_82, %c0_83] : memref<8x36xf32, #tpu.memory_space<vmem>>, vector<8x36xf32>
    %c0_84 = arith.constant 0 : index
    %c0_85 = arith.constant 0 : index
    %67 = vector.load %arg13[%c0_84, %c0_85] : memref<36x512xf32, #tpu.memory_space<vmem>>, vector<36x512xf32>
    %cst_86 = arith.constant dense<0.000000e+00> : vector<8x512xf32>
    %68 = tpu.matmul %66, %67, %cst_86 {dimension_numbers = #tpu.dot_dimension_numbers<[1], [0], [0], [1], [0, 0, 1, 1], [], []>} : vector<8x36xf32>, vector<36x512xf32>, vector<8x512xf32> -> vector<8x512xf32>
    %cst_87 = arith.constant dense<0.000000e+00> : vector<8xf32>
    %69 = vector.multi_reduction <add>, %68, %cst_87 [1] : vector<8x512xf32> to vector<8xf32>
    %70 = vector.shape_cast %69 : vector<8xf32> to vector<8x1xf32>
    %cst_88 = arith.constant 5.120000e+02 : f32
    %71 = vector.broadcast %cst_88 : f32 to vector<8x1xf32>
    %72 = arith.divf %70, %71 : vector<8x1xf32>
    %73 = vector.broadcast %72 : vector<8x1xf32> to vector<8x512xf32>
    %74 = arith.subf %68, %73 : vector<8x512xf32>
    %75 = arith.mulf %74, %74 : vector<8x512xf32>
    %cst_89 = arith.constant dense<0.000000e+00> : vector<8xf32>
    %76 = vector.multi_reduction <add>, %75, %cst_89 [1] : vector<8x512xf32> to vector<8xf32>
    %77 = vector.shape_cast %76 : vector<8xf32> to vector<8x1xf32>
    %cst_90 = arith.constant 5.120000e+02 : f32
    %78 = vector.broadcast %cst_90 : f32 to vector<8x1xf32>
    %79 = arith.divf %77, %78 : vector<8x1xf32>
    %c0_91 = arith.constant 0 : index
    %c0_92 = arith.constant 0 : index
    %80 = vector.load %arg5[%c0_91, %c0_92] : memref<8x1xf32, #tpu.memory_space<vmem>>, vector<8x1xf32>
    %cst_93 = arith.constant 9.99999974E-6 : f32
    %81 = vector.broadcast %cst_93 : f32 to vector<8x1xf32>
    %82 = arith.addf %79, %81 : vector<8x1xf32>
    %83 = math.rsqrt %82 : vector<8x1xf32>
    %84 = arith.mulf %80, %83 : vector<8x1xf32>
    %85 = vector.broadcast %84 : vector<8x1xf32> to vector<8x512xf32>
    %86 = arith.mulf %74, %85 : vector<8x512xf32>
    %c0_94 = arith.constant 0 : index
    %c0_95 = arith.constant 0 : index
    %87 = vector.load %arg6[%c0_94, %c0_95] : memref<8x1xf32, #tpu.memory_space<vmem>>, vector<8x1xf32>
    %88 = vector.broadcast %87 : vector<8x1xf32> to vector<8x512xf32>
    %89 = arith.addf %86, %88 : vector<8x512xf32>
    %cst_96 = arith.constant 0.000000e+00 : f32
    %90 = vector.broadcast %cst_96 : f32 to vector<8x512xf32>
    %91 = arith.cmpf oge, %89, %90 : vector<8x512xf32>
    %cst_97 = arith.constant 0.00999999977 : f32
    %92 = vector.broadcast %cst_97 : f32 to vector<8x512xf32>
    %93 = arith.mulf %92, %89 : vector<8x512xf32>
    %94 = arith.select %91, %89, %93 : vector<8x512xi1>, vector<8x512xf32>
    %c0_98 = arith.constant 0 : index
    %c0_99 = arith.constant 0 : index
    %c0_100 = arith.constant 0 : index
    %95 = vector.load %arg3[%c0_98, %c0_99, %c0_100] : memref<2x8x256xf32, #tpu.memory_space<vmem>>, vector<1x8x256xf32>
    %96 = vector.shape_cast %95 : vector<1x8x256xf32> to vector<8x256xf32>
    %c1_101 = arith.constant 1 : index
    %c0_102 = arith.constant 0 : index
    %c0_103 = arith.constant 0 : index
    %97 = vector.load %arg3[%c1_101, %c0_102, %c0_103] : memref<2x8x256xf32, #tpu.memory_space<vmem>>, vector<1x8x256xf32>
    %98 = vector.shape_cast %97 : vector<1x8x256xf32> to vector<8x256xf32>
    %99 = vector.extract_strided_slice %94 {offsets = [0, 0], sizes = [8, 256], strides = [1, 1]} : vector<8x512xf32> to vector<8x256xf32>
    %c0_104 = arith.constant 0 : index
    %c17_105 = arith.constant 17 : index
    %100 = vector.load %arg12[%c0_104, %c17_105] : memref<8x290xf32, #tpu.memory_space<vmem>>, vector<8x256xf32>
    tpu.vector_store %arg12[%c0_104, %c17_105], %99 {strides = array<i32>} : memref<8x290xf32, #tpu.memory_space<vmem>>, vector<8x256xf32>,
    %c0_106 = arith.constant 0 : index
    %c0_107 = arith.constant 0 : index
    %101 = vector.load %arg12[%c0_106, %c0_107] : memref<8x290xf32, #tpu.memory_space<vmem>>, vector<8x256xf32>
    %102 = arith.mulf %101, %96 : vector<8x256xf32>
    %c0_108 = arith.constant 0 : index
    %c0_109 = arith.constant 0 : index
    %103 = vector.load %arg14[%c0_108, %c0_109] : memref<72x512xf32, #tpu.memory_space<vmem>>, vector<8x256xf32>
    tpu.vector_store %arg14[%c0_108, %c0_109], %102 {strides = array<i32>} : memref<72x512xf32, #tpu.memory_space<vmem>>, vector<8x256xf32>,
    %c0_110 = arith.constant 0 : index
    %c1_111 = arith.constant 1 : index
    %104 = vector.load %arg12[%c0_110, %c1_111] : memref<8x290xf32, #tpu.memory_space<vmem>>, vector<8x256xf32>
    %c8_112 = arith.constant 8 : index
    %c0_113 = arith.constant 0 : index
    %105 = vector.load %arg14[%c8_112, %c0_113] : memref<72x512xf32, #tpu.memory_space<vmem>>, vector<8x256xf32>
    tpu.vector_store %arg14[%c8_112, %c0_113], %104 {strides = array<i32>} : memref<72x512xf32, #tpu.memory_space<vmem>>, vector<8x256xf32>,
    %c0_114 = arith.constant 0 : index
    %c2_115 = arith.constant 2 : index
    %106 = vector.load %arg12[%c0_114, %c2_115] : memref<8x290xf32, #tpu.memory_space<vmem>>, vector<8x256xf32>
    %107 = arith.mulf %106, %98 : vector<8x256xf32>
    %c16_116 = arith.constant 16 : index
    %c0_117 = arith.constant 0 : index
    %108 = vector.load %arg14[%c16_116, %c0_117] : memref<72x512xf32, #tpu.memory_space<vmem>>, vector<8x256xf32>
    tpu.vector_store %arg14[%c16_116, %c0_117], %107 {strides = array<i32>} : memref<72x512xf32, #tpu.memory_space<vmem>>, vector<8x256xf32>,
    %c0_118 = arith.constant 0 : index
    %c16_119 = arith.constant 16 : index
    %109 = vector.load %arg12[%c0_118, %c16_119] : memref<8x290xf32, #tpu.memory_space<vmem>>, vector<8x256xf32>
    %110 = arith.mulf %109, %96 : vector<8x256xf32>
    %c24_120 = arith.constant 24 : index
    %c0_121 = arith.constant 0 : index
    %111 = vector.load %arg14[%c24_120, %c0_121] : memref<72x512xf32, #tpu.memory_space<vmem>>, vector<8x256xf32>
    tpu.vector_store %arg14[%c24_120, %c0_121], %110 {strides = array<i32>} : memref<72x512xf32, #tpu.memory_space<vmem>>, vector<8x256xf32>,
    %c0_122 = arith.constant 0 : index
    %c17_123 = arith.constant 17 : index
    %112 = vector.load %arg12[%c0_122, %c17_123] : memref<8x290xf32, #tpu.memory_space<vmem>>, vector<8x256xf32>
    %c32_124 = arith.constant 32 : index
    %c0_125 = arith.constant 0 : index
    %113 = vector.load %arg14[%c32_124, %c0_125] : memref<72x512xf32, #tpu.memory_space<vmem>>, vector<8x256xf32>
    tpu.vector_store %arg14[%c32_124, %c0_125], %112 {strides = array<i32>} : memref<72x512xf32, #tpu.memory_space<vmem>>, vector<8x256xf32>,
    %c0_126 = arith.constant 0 : index
    %c18_127 = arith.constant 18 : index
    %114 = vector.load %arg12[%c0_126, %c18_127] : memref<8x290xf32, #tpu.memory_space<vmem>>, vector<8x256xf32>
    %115 = arith.mulf %114, %98 : vector<8x256xf32>
    %c40 = arith.constant 40 : index
    %c0_128 = arith.constant 0 : index
    %116 = vector.load %arg14[%c40, %c0_128] : memref<72x512xf32, #tpu.memory_space<vmem>>, vector<8x256xf32>
    tpu.vector_store %arg14[%c40, %c0_128], %115 {strides = array<i32>} : memref<72x512xf32, #tpu.memory_space<vmem>>, vector<8x256xf32>,
    %c0_129 = arith.constant 0 : index
    %c32_130 = arith.constant 32 : index
    %117 = vector.load %arg12[%c0_129, %c32_130] : memref<8x290xf32, #tpu.memory_space<vmem>>, vector<8x256xf32>
    %118 = arith.mulf %117, %96 : vector<8x256xf32>
    %c48 = arith.constant 48 : index
    %c0_131 = arith.constant 0 : index
    %119 = vector.load %arg14[%c48, %c0_131] : memref<72x512xf32, #tpu.memory_space<vmem>>, vector<8x256xf32>
    tpu.vector_store %arg14[%c48, %c0_131], %118 {strides = array<i32>} : memref<72x512xf32, #tpu.memory_space<vmem>>, vector<8x256xf32>,
    %c0_132 = arith.constant 0 : index
    %c33_133 = arith.constant 33 : index
    %120 = vector.load %arg12[%c0_132, %c33_133] : memref<8x290xf32, #tpu.memory_space<vmem>>, vector<8x256xf32>
    %c56 = arith.constant 56 : index
    %c0_134 = arith.constant 0 : index
    %121 = vector.load %arg14[%c56, %c0_134] : memref<72x512xf32, #tpu.memory_space<vmem>>, vector<8x256xf32>
    tpu.vector_store %arg14[%c56, %c0_134], %120 {strides = array<i32>} : memref<72x512xf32, #tpu.memory_space<vmem>>, vector<8x256xf32>,
    %c0_135 = arith.constant 0 : index
    %c34_136 = arith.constant 34 : index
    %122 = vector.load %arg12[%c0_135, %c34_136] : memref<8x290xf32, #tpu.memory_space<vmem>>, vector<8x256xf32>
    %123 = arith.mulf %122, %98 : vector<8x256xf32>
    %c64 = arith.constant 64 : index
    %c0_137 = arith.constant 0 : index
    %124 = vector.load %arg14[%c64, %c0_137] : memref<72x512xf32, #tpu.memory_space<vmem>>, vector<8x256xf32>
    tpu.vector_store %arg14[%c64, %c0_137], %123 {strides = array<i32>} : memref<72x512xf32, #tpu.memory_space<vmem>>, vector<8x256xf32>,
    %125 = vector.extract_strided_slice %94 {offsets = [0, 256], sizes = [8, 256], strides = [1, 1]} : vector<8x512xf32> to vector<8x256xf32>
    %c0_138 = arith.constant 0 : index
    %c17_139 = arith.constant 17 : index
    %126 = vector.load %arg12[%c0_138, %c17_139] : memref<8x290xf32, #tpu.memory_space<vmem>>, vector<8x256xf32>
    tpu.vector_store %arg12[%c0_138, %c17_139], %125 {strides = array<i32>} : memref<8x290xf32, #tpu.memory_space<vmem>>, vector<8x256xf32>,
    %c0_140 = arith.constant 0 : index
    %c0_141 = arith.constant 0 : index
    %127 = vector.load %arg12[%c0_140, %c0_141] : memref<8x290xf32, #tpu.memory_space<vmem>>, vector<8x256xf32>
    %128 = arith.mulf %127, %96 : vector<8x256xf32>
    %c0_142 = arith.constant 0 : index
    %c256_143 = arith.constant 256 : index
    %129 = vector.load %arg14[%c0_142, %c256_143] : memref<72x512xf32, #tpu.memory_space<vmem>>, vector<8x256xf32>
    tpu.vector_store %arg14[%c0_142, %c256_143], %128 {strides = array<i32>} : memref<72x512xf32, #tpu.memory_space<vmem>>, vector<8x256xf32>,
    %c0_144 = arith.constant 0 : index
    %c1_145 = arith.constant 1 : index
    %130 = vector.load %arg12[%c0_144, %c1_145] : memref<8x290xf32, #tpu.memory_space<vmem>>, vector<8x256xf32>
    %c8_146 = arith.constant 8 : index
    %c256_147 = arith.constant 256 : index
    %131 = vector.load %arg14[%c8_146, %c256_147] : memref<72x512xf32, #tpu.memory_space<vmem>>, vector<8x256xf32>
    tpu.vector_store %arg14[%c8_146, %c256_147], %130 {strides = array<i32>} : memref<72x512xf32, #tpu.memory_space<vmem>>, vector<8x256xf32>,
    %c0_148 = arith.constant 0 : index
    %c2_149 = arith.constant 2 : index
    %132 = vector.load %arg12[%c0_148, %c2_149] : memref<8x290xf32, #tpu.memory_space<vmem>>, vector<8x256xf32>
    %133 = arith.mulf %132, %98 : vector<8x256xf32>
    %c16_150 = arith.constant 16 : index
    %c256_151 = arith.constant 256 : index
    %134 = vector.load %arg14[%c16_150, %c256_151] : memref<72x512xf32, #tpu.memory_space<vmem>>, vector<8x256xf32>
    tpu.vector_store %arg14[%c16_150, %c256_151], %133 {strides = array<i32>} : memref<72x512xf32, #tpu.memory_space<vmem>>, vector<8x256xf32>,
    %c0_152 = arith.constant 0 : index
    %c16_153 = arith.constant 16 : index
    %135 = vector.load %arg12[%c0_152, %c16_153] : memref<8x290xf32, #tpu.memory_space<vmem>>, vector<8x256xf32>
    %136 = arith.mulf %135, %96 : vector<8x256xf32>
    %c24_154 = arith.constant 24 : index
    %c256_155 = arith.constant 256 : index
    %137 = vector.load %arg14[%c24_154, %c256_155] : memref<72x512xf32, #tpu.memory_space<vmem>>, vector<8x256xf32>
    tpu.vector_store %arg14[%c24_154, %c256_155], %136 {strides = array<i32>} : memref<72x512xf32, #tpu.memory_space<vmem>>, vector<8x256xf32>,
    %c0_156 = arith.constant 0 : index
    %c17_157 = arith.constant 17 : index
    %138 = vector.load %arg12[%c0_156, %c17_157] : memref<8x290xf32, #tpu.memory_space<vmem>>, vector<8x256xf32>
    %c32_158 = arith.constant 32 : index
    %c256_159 = arith.constant 256 : index
    %139 = vector.load %arg14[%c32_158, %c256_159] : memref<72x512xf32, #tpu.memory_space<vmem>>, vector<8x256xf32>
    tpu.vector_store %arg14[%c32_158, %c256_159], %138 {strides = array<i32>} : memref<72x512xf32, #tpu.memory_space<vmem>>, vector<8x256xf32>,
    %c0_160 = arith.constant 0 : index
    %c18_161 = arith.constant 18 : index
    %140 = vector.load %arg12[%c0_160, %c18_161] : memref<8x290xf32, #tpu.memory_space<vmem>>, vector<8x256xf32>
    %141 = arith.mulf %140, %98 : vector<8x256xf32>
    %c40_162 = arith.constant 40 : index
    %c256_163 = arith.constant 256 : index
    %142 = vector.load %arg14[%c40_162, %c256_163] : memref<72x512xf32, #tpu.memory_space<vmem>>, vector<8x256xf32>
    tpu.vector_store %arg14[%c40_162, %c256_163], %141 {strides = array<i32>} : memref<72x512xf32, #tpu.memory_space<vmem>>, vector<8x256xf32>,
    %c0_164 = arith.constant 0 : index
    %c32_165 = arith.constant 32 : index
    %143 = vector.load %arg12[%c0_164, %c32_165] : memref<8x290xf32, #tpu.memory_space<vmem>>, vector<8x256xf32>
    %144 = arith.mulf %143, %96 : vector<8x256xf32>
    %c48_166 = arith.constant 48 : index
    %c256_167 = arith.constant 256 : index
    %145 = vector.load %arg14[%c48_166, %c256_167] : memref<72x512xf32, #tpu.memory_space<vmem>>, vector<8x256xf32>
    tpu.vector_store %arg14[%c48_166, %c256_167], %144 {strides = array<i32>} : memref<72x512xf32, #tpu.memory_space<vmem>>, vector<8x256xf32>,
    %c0_168 = arith.constant 0 : index
    %c33_169 = arith.constant 33 : index
    %146 = vector.load %arg12[%c0_168, %c33_169] : memref<8x290xf32, #tpu.memory_space<vmem>>, vector<8x256xf32>
    %c56_170 = arith.constant 56 : index
    %c256_171 = arith.constant 256 : index
    %147 = vector.load %arg14[%c56_170, %c256_171] : memref<72x512xf32, #tpu.memory_space<vmem>>, vector<8x256xf32>
    tpu.vector_store %arg14[%c56_170, %c256_171], %146 {strides = array<i32>} : memref<72x512xf32, #tpu.memory_space<vmem>>, vector<8x256xf32>,
    %c0_172 = arith.constant 0 : index
    %c34_173 = arith.constant 34 : index
    %148 = vector.load %arg12[%c0_172, %c34_173] : memref<8x290xf32, #tpu.memory_space<vmem>>, vector<8x256xf32>
    %149 = arith.mulf %148, %98 : vector<8x256xf32>
    %c64_174 = arith.constant 64 : index
    %c256_175 = arith.constant 256 : index
    %150 = vector.load %arg14[%c64_174, %c256_175] : memref<72x512xf32, #tpu.memory_space<vmem>>, vector<8x256xf32>
    tpu.vector_store %arg14[%c64_174, %c256_175], %149 {strides = array<i32>} : memref<72x512xf32, #tpu.memory_space<vmem>>, vector<8x256xf32>,
    %c0_176 = arith.constant 0 : index
    %c0_177 = arith.constant 0 : index
    %151 = vector.load %arg7[%c0_176, %c0_177] : memref<8x72xf32, #tpu.memory_space<vmem>>, vector<8x72xf32>
    %c0_178 = arith.constant 0 : index
    %c0_179 = arith.constant 0 : index
    %152 = vector.load %arg14[%c0_178, %c0_179] : memref<72x512xf32, #tpu.memory_space<vmem>>, vector<72x512xf32>
    %cst_180 = arith.constant dense<0.000000e+00> : vector<8x512xf32>
    %153 = tpu.matmul %151, %152, %cst_180 {dimension_numbers = #tpu.dot_dimension_numbers<[1], [0], [0], [1], [0, 0, 1, 1], [], []>} : vector<8x72xf32>, vector<72x512xf32>, vector<8x512xf32> -> vector<8x512xf32>
    %cst_181 = arith.constant dense<0.000000e+00> : vector<8xf32>
    %154 = vector.multi_reduction <add>, %153, %cst_181 [1] : vector<8x512xf32> to vector<8xf32>
    %155 = vector.shape_cast %154 : vector<8xf32> to vector<8x1xf32>
    %cst_182 = arith.constant 5.120000e+02 : f32
    %156 = vector.broadcast %cst_182 : f32 to vector<8x1xf32>
    %157 = arith.divf %155, %156 : vector<8x1xf32>
    %158 = vector.broadcast %157 : vector<8x1xf32> to vector<8x512xf32>
    %159 = arith.subf %153, %158 : vector<8x512xf32>
    %160 = arith.mulf %159, %159 : vector<8x512xf32>
    %cst_183 = arith.constant dense<0.000000e+00> : vector<8xf32>
    %161 = vector.multi_reduction <add>, %160, %cst_183 [1] : vector<8x512xf32> to vector<8xf32>
    %162 = vector.shape_cast %161 : vector<8xf32> to vector<8x1xf32>
    %cst_184 = arith.constant 5.120000e+02 : f32
    %163 = vector.broadcast %cst_184 : f32 to vector<8x1xf32>
    %164 = arith.divf %162, %163 : vector<8x1xf32>
    %c0_185 = arith.constant 0 : index
    %c0_186 = arith.constant 0 : index
    %165 = vector.load %arg8[%c0_185, %c0_186] : memref<8x1xf32, #tpu.memory_space<vmem>>, vector<8x1xf32>
    %cst_187 = arith.constant 9.99999974E-6 : f32
    %166 = vector.broadcast %cst_187 : f32 to vector<8x1xf32>
    %167 = arith.addf %164, %166 : vector<8x1xf32>
    %168 = math.rsqrt %167 : vector<8x1xf32>
    %169 = arith.mulf %165, %168 : vector<8x1xf32>
    %170 = vector.broadcast %169 : vector<8x1xf32> to vector<8x512xf32>
    %171 = arith.mulf %159, %170 : vector<8x512xf32>
    %c0_188 = arith.constant 0 : index
    %c0_189 = arith.constant 0 : index
    %172 = vector.load %arg9[%c0_188, %c0_189] : memref<8x1xf32, #tpu.memory_space<vmem>>, vector<8x1xf32>
    %173 = vector.broadcast %172 : vector<8x1xf32> to vector<8x512xf32>
    %174 = arith.addf %171, %173 : vector<8x512xf32>
    %cst_190 = arith.constant 0.000000e+00 : f32
    %175 = vector.broadcast %cst_190 : f32 to vector<8x512xf32>
    %176 = arith.cmpf oge, %174, %175 : vector<8x512xf32>
    %cst_191 = arith.constant 0.00999999977 : f32
    %177 = vector.broadcast %cst_191 : f32 to vector<8x512xf32>
    %178 = arith.mulf %177, %174 : vector<8x512xf32>
    %179 = arith.select %176, %174, %178 : vector<8x512xi1>, vector<8x512xf32>
    %180 = vector.extract_strided_slice %179 {offsets = [0, 0], sizes = [8, 256], strides = [1, 1]} : vector<8x512xf32> to vector<8x256xf32>
    %c0_192 = arith.constant 0 : index
    %c0_193 = arith.constant 0 : index
    %c0_194 = arith.constant 0 : index
    %181 = vector.load %arg10[%c0_192, %c0_193, %c0_194] : memref<2x8x256xf32, #tpu.memory_space<vmem>>, vector<1x8x256xf32>
    %182 = vector.shape_cast %181 : vector<1x8x256xf32> to vector<8x256xf32>
    %183 = vector.shape_cast %180 : vector<8x256xf32> to vector<1x8x256xf32>
    tpu.vector_store %arg10[%c0_192, %c0_193, %c0_194], %183 {strides = array<i32>} : memref<2x8x256xf32, #tpu.memory_space<vmem>>, vector<1x8x256xf32>,
    %184 = vector.extract_strided_slice %179 {offsets = [0, 256], sizes = [8, 256], strides = [1, 1]} : vector<8x512xf32> to vector<8x256xf32>
    %c1_195 = arith.constant 1 : index
    %c0_196 = arith.constant 0 : index
    %c0_197 = arith.constant 0 : index
    %185 = vector.load %arg10[%c1_195, %c0_196, %c0_197] : memref<2x8x256xf32, #tpu.memory_space<vmem>>, vector<1x8x256xf32>
    %186 = vector.shape_cast %185 : vector<1x8x256xf32> to vector<8x256xf32>
    %187 = vector.shape_cast %184 : vector<8x256xf32> to vector<1x8x256xf32>
    tpu.vector_store %arg10[%c1_195, %c0_196, %c0_197], %187 {strides = array<i32>} : memref<2x8x256xf32, #tpu.memory_space<vmem>>, vector<1x8x256xf32>,
    return
  }
  func.func @transform_0(%arg0: i32) -> (i32, i32, i32) {
    %c0_i32 = arith.constant 0 : i32
    %c0_i32_0 = arith.constant 0 : i32
    %c0_i32_1 = arith.constant 0 : i32
    %c0_i32_2 = arith.constant 0 : i32
    return %c0_i32, %c0_i32_0, %c0_i32_1 : i32, i32, i32
  }
  func.func @transform_1(%arg0: i32) -> (i32, i32, i32) {
    %c0_i32 = arith.constant 0 : i32
    %c0_i32_0 = arith.constant 0 : i32
    %c0_i32_1 = arith.constant 0 : i32
    %c0_i32_2 = arith.constant 0 : i32
    return %c0_i32, %c0_i32_0, %c0_i32_1 : i32, i32, i32
  }
  func.func @transform_2(%arg0: i32) -> (i32, i32, i32) {
    %c0_i32 = arith.constant 0 : i32
    %c0_i32_0 = arith.constant 0 : i32
    %c0_i32_1 = arith.constant 0 : i32
    %c0_i32_2 = arith.constant 0 : i32
    return %c0_i32, %c0_i32_0, %c0_i32_1 : i32, i32, i32
  }
  func.func @transform_3(%arg0: i32) -> (i32, i32) {
    %c0_i32 = arith.constant 0 : i32
    %c0_i32_0 = arith.constant 0 : i32
    %c0_i32_1 = arith.constant 0 : i32
    return %c0_i32, %c0_i32_0 : i32, i32
  }
  func.func @transform_4(%arg0: i32) -> (i32, i32) {
    %c0_i32 = arith.constant 0 : i32
    %c0_i32_0 = arith.constant 0 : i32
    %c0_i32_1 = arith.constant 0 : i32
    return %c0_i32, %c0_i32_0 : i32, i32
  }
  func.func @transform_5(%arg0: i32) -> (i32, i32) {
    %c0_i32 = arith.constant 0 : i32
    %c0_i32_0 = arith.constant 0 : i32
    %c0_i32_1 = arith.constant 0 : i32
    return %c0_i32, %c0_i32_0 : i32, i32
  }
  func.func @transform_6(%arg0: i32) -> (i32, i32) {
    %c0_i32 = arith.constant 0 : i32
    %c0_i32_0 = arith.constant 0 : i32
    %c0_i32_1 = arith.constant 0 : i32
    return %c0_i32, %c0_i32_0 : i32, i32
  }
  func.func @transform_7(%arg0: i32) -> (i32, i32) {
    %c0_i32 = arith.constant 0 : i32
    %c0_i32_0 = arith.constant 0 : i32
    %c0_i32_1 = arith.constant 0 : i32
    return %c0_i32, %c0_i32_0 : i32, i32
  }
  func.func @transform_8(%arg0: i32) -> (i32, i32) {
    %c0_i32 = arith.constant 0 : i32
    %c0_i32_0 = arith.constant 0 : i32
    %c0_i32_1 = arith.constant 0 : i32
    return %c0_i32, %c0_i32_0 : i32, i32
  }
  func.func @transform_9(%arg0: i32) -> (i32, i32, i32) {
    %c0_i32 = arith.constant 0 : i32
    %c0_i32_0 = arith.constant 0 : i32
    %c0_i32_1 = arith.constant 0 : i32
    %c0_i32_2 = arith.constant 0 : i32
    return %c0_i32, %c0_i32_0, %c0_i32_1 : i32, i32, i32
  }
}

</mosaic_0001>

<bundles_post_ra>
// kernel: convolution_block.1
= control target key start
LH: loop header
LB: loop body
LE: loop exit
PB: predicated region body
PF: predicated region fallthrough
CT: control target
= control target key end

     0   :  { %vm32_vm0 = vcmask 134144   ;;  %vm34_vm1 = vcmask 273544   ;;  %v1510_v2 = vmov 0.0   ;;  %vm36_vm2 = vcmask 138240   ;;  %s1511_s13 = smov 2   ;;  %s1512_s14 = smov 17   ;;  %s2001_s1 = inlined_call_operand.vmem [shape: f32[2,4,256], index: 1, kind: input, shape index: {}]   ;;  %s2002_s0 = inlined_call_operand.vmem [shape: f32[2,4,256], index: 0, kind: input, shape index: {}]   ;;  %s2003_s3 = inlined_call_operand.vmem [shape: f32[8,36], index: 3, kind: input, shape index: {}]   ;;  %s2004_s5 = inlined_call_operand.vmem [shape: f32[8,1], index: 5, kind: input, shape index: {}]   ;;  %s2005_s4 = inlined_call_operand.vmem [shape: f32[8,1], index: 4, kind: input, shape index: {}]   ;;  %s2006_s2 = inlined_call_operand.vmem [shape: f32[2,8,256], index: 2, kind: input, shape index: {}]   ;;  %s2007_s6 = inlined_call_operand.vmem [shape: f32[8,72], index: 6, kind: input, shape index: {}]   ;;  %s2008_s8 = inlined_call_operand.vmem [shape: f32[8,1], index: 8, kind: input, shape index: {}]   ;;  %s2009_s7 = inlined_call_operand.vmem [shape: f32[8,1], index: 7, kind: input, shape index: {}]   ;;  %s2010_s9 = inlined_call_operand.vmem [shape: f32[2,8,256], index: 9, kind: output, shape index: {}]  }
   0x1   :  { %v1315_v0 = vld [vmem:[%s2001_s1 + $0x8] sm:$0xff]  ;;  %v43_v1 = vld [vmem:[%s2002_s0] sm:$0xff]  ;;  %33 = vst.msk [vmem:[#allocation2] sm:$0xf] %vm32_vm0, %v1510_v2  ;;  %528 = vmatprep.mubr.f32.mxu0 %v1510_v2  ;;  %599 = vmatprep.mubr.f32.mxu1 %v1510_v2  ;;  %s1513_s19 = smov 16   ;;  %s1514_s20 = smov 18  }
   0x2   :  { %35 = vst.msk [vmem:[#allocation2 + $0x8] sm:$0xf] %vm34_vm1, %v1510_v2  ;;  %85 = vrot.lane.b32.xlu1 %v1315_v0, %s1511_s13  ;;  %45 = vrot.lane.b32.xlu0 %v43_v1, %s1512_s14  ;;  %v40_v3 = vld [vmem:[%s2001_s1] sm:$0xff]  ;;  %v1316_v4 = vld [vmem:[%s2002_s0 + $0x8] sm:$0xff]  ;;  %s1515_s21 = smov 32   ;;  %s1516_s22 = smov 34  }
   0x3   :  { %37 = vst.msk [vmem:[#allocation3] sm:$0xff] %vm36_vm2, %v1510_v2  ;;  %vm51_vm3 = vcmask 1043592   ;;  %vm52_vm4 = vcmask 1047556   ;;  %s1517_s0 = smov 111   ;;  %s1518_s1 = smov 95   ;;  %vm88_vm6 = vcmask 15360  }
   0x4   :  { %vm1602_vm5 = vmor %vm52_vm4, %vm51_vm3  ;;  %s1519_s23 = smov 127   ;;  %s1520_s24 = smov 126   ;;  %vm116_vm7 = vcmask 130048   ;;  %vm162_vm8 = vcmask 146432   ;;  %vm190_vm9 = vcmask 261120   ;;  %vm236_vm10 = vcmask 277504  }
   0x5   :  { %s1521_s25 = smov 96   ;;  %s1522_s26 = smov 94   ;;  %vm75_vm11 = vcmask 1039360   ;;  %vm224_vm12 = vcmask 777216   ;;  %vm150_vm13 = vcmask 908288   ;;  %vm178_vm14 = vcmask 900096  }
   0x6   :  { %113 = vrot.lane.b32.xlu1 %v40_v3, %s1513_s19  ;;  %261 = vrot.lane.b32.xlu0 %v1316_v4, %s1512_s14  ;;  %s1523_s27 = smov 112   ;;  %s1524_s28 = smov 110   ;;  %vm132_vm15 = vcmask 916480   ;;  %vm2012_vm1 = vcmask 785408   ;;  %vm2011_vm3 = vcmask 769024   ;;  %vm451_vm4 = vcmask 1043456  }
   0xa   :  { %159 = vrot.lane.b32.xlu1 %v1315_v0, %s1514_s20  ;;  %187 = vrot.lane.b32.xlu0 %v40_v3, %s1515_s21 }
   0xe   :  { %233 = vrot.lane.b32.xlu0 %v1315_v0, %s1516_s22 }
  0x74   :  { %v46_v5 = vpop.permute.xlu0 %45  ;;  %v86_v18 = vpop.permute.xlu1 %85 }
  0x75   :  { %v47_v7 = vrot.slane %v46_v5, 4  ;;  %v1620_v23 = vrot.slane %v86_v18, 4 }
  0x77   :  { %v48_v8 = vsel %vm36_vm2, %v47_v7, %v46_v5  ;;  %55 = vst.msk [vmem:[#allocation2 + $0x8] sm:$0xf] %vm32_vm0, %v47_v7  ;;  %v1645_v36 = vsel %vm88_vm6, %v1620_v23, %v86_v18 }
  0x78   :  { %54 = vst.msk [vmem:[#allocation2] sm:$0xff] %vm1602_vm5, %v48_v8  ;;  %v262_v9 = vpop.permute.xlu0 %261  ;;  %v114_v27 = vpop.permute.xlu1 %113 }
  0x79   :  { %v263_v10 = vrot.slane %v262_v9, 4  ;;  %v1640_v34 = vrot.slane %v114_v27, 4 }
  0x7b   :  { %v264_v11 = vsel %vm36_vm2, %v263_v10, %v262_v9  ;;  %v117_v39 = vsel %vm116_vm7, %v1640_v34, %v114_v27 }
  0x7c   :  { %v1611_v12 = vpop.permute.xlu0 %187  ;;  %v160_v38 = vpop.permute.xlu1 %159 }
  0x7d   :  { %v1627_v25 = vrot.slane %v1611_v12, 4  ;;  %v161_v41 = vrot.slane %v160_v38, 4 }
  0x7e   :  { %v140_v13 = vld [vmem:[#allocation2 + $0x8] sm:$0xf] }
  0x7f   :  { %v1500_v14 = vld [vmem:[#allocation2 + $0x8] ss:$0 sps:$4 sm:$0xff]   ;;  %v1613_v15 = vld [vmem:[#allocation2] sm:$0xff]  ;;  %148 = vrot.lane.b32.xlu1 %v140_v13, %s1517_s0  ;;  %v163_v44 = vsel %vm162_vm8, %v161_v41, %v160_v38  ;;  %v191_v46 = vsel %vm190_vm9, %v1627_v25, %v1611_v12 }
  0x80   :  { %v83_v16 = vld [vmem:[#allocation2 + $0x8] sm:$0xf]  ;;  %220 = vrot.lane.b32.xlu0 %v1613_v15, %s1518_s1  ;;  %267 = vst.msk [vmem:[#allocation2] sm:$0xff] %vm1602_vm5, %v264_v11  ;;  %v234_v24 = vpop.permute.xlu0 %233  ;;  %v57_v26 = vmul.f32 %v1613_v15, %v40_v3  ;;  %v92_v40 = vmul.f32 %v1645_v36, %v1613_v15  ;;  %v120_v42 = vmul.f32 %v117_v39, %v1613_v15  ;;  %vm447_vm5 = vcmask 293888  }
  0x81   :  { %v186_v17 = vld [vmem:[#allocation2 + $0x8] sm:$0xf]  ;;  %v1630_v28 = vrot.slane %v234_v24, 4  ;;  %v93_v29 = vmul.f32 %v1620_v23, %v83_v16  ;;  %v143_v43 = vcombine.high %v1613_v15, %v1613_v15  ;;  %v67_v45 = vcombine.low %v1613_v15, %v1613_v15 }
  0x82   :  { %v232_v19 = vld [vmem:[#allocation2 + $0x8] sm:$0xf]  ;;  %v59_v31 = vcombine.high %v57_v26, %v57_v26  ;;  %61 = vst [vmem:[#allocation4] sm:$0xf] %v57_v26  ;;  %v195_v32 = vmul.f32 %v1627_v25, %v186_v17  ;;  %v166_v47 = vmul.f32 %v163_v44, %v1613_v15  ;;  %v194_v48 = vmul.f32 %v191_v46, %v1613_v15 }
  0x83   :  { %v1501_v20 = vld [vmem:[#allocation2 + $0x8] ss:$0 sps:$4 sm:$0xff]   ;;  %71 = vrot.lane.b32.xlu1 %v1613_v15, %s1519_s23  ;;  %v241_v35 = vmul.f32 %v1630_v28, %v232_v19  ;;  %v96_v53 = vcombine.high %v92_v40, %v92_v40  ;;  %v237_v54 = vsel %vm236_vm10, %v1630_v28, %v234_v24  ;;  %v124_v57 = vcombine.low %v120_v42, %v120_v42 }
  0x84   :  { %v158_v21 = vld [vmem:[#allocation2 + $0x8] sm:$0xf]  ;;  %73 = vrot.lane.b32.xlu0 %v1500_v14, %s1519_s23  ;;  %62 = vst [vmem:[#allocation4 + $0x8] sm:$0xf] %v59_v31  ;;  %v198_v55 = vcombine.high %v194_v48, %v194_v48  ;;  %v240_v56 = vmul.f32 %v237_v54, %v1613_v15  ;;  %v170_v58 = vcombine.low %v166_v47, %v166_v47 }
  0x85   :  { %v111_v22 = vld [vmem:[#allocation2 + $0x8] sm:$0xf]  ;;  %v167_v49 = vmul.f32 %v161_v41, %v158_v21 }
  0x86   :  { %268 = vst.msk [vmem:[#allocation2 + $0x8] sm:$0xf] %vm32_vm0, %v263_v10  ;;  %v121_v50 = vmul.f32 %v1640_v34, %v111_v22  ;;  %v244_v59 = vcombine.high %v240_v56, %v240_v56  ;;  %vm103_vm0 = vcmask 1031168  }
  0x87   :  { %144 = vrot.lane.b32.xlu1 %v1613_v15, %s1517_s0  ;;  %v1635_v30 = vld [vmem:[#allocation2] sm:$0xff]  ;;  %v171_v51 = vcombine.low %v167_v49, %v167_v49 }
  0x88   :  { %101 = vrot.lane.b32.xlu0 %v93_v29, %s1520_s24  ;;  %v270_v33 = vmul.f32 %v1635_v30, %v40_v3  ;;  %v125_v52 = vcombine.low %v121_v50, %v121_v50  ;;  %v315_v4 = vmul.f32 %v1635_v30, %v117_v39  ;;  %v296_v5 = vmul.f32 %v1635_v30, %v1645_v36 }
  0x89   :  { %v393_v6 = vcombine.low %v1635_v30, %v1635_v30  ;;  %v337_v8 = vcombine.high %v1635_v30, %v1635_v30  ;;  %v352_v10 = vmul.f32 %v1635_v30, %v163_v44  ;;  %v372_v13 = vmul.f32 %v1635_v30, %v191_v46 }
  0x8a   :  { %v272_v37 = vcombine.high %v270_v33, %v270_v33  ;;  %274 = vst [vmem:[#allocation4 + $0x10] sm:$0xf] %v270_v33  ;;  %v300_v15 = vcombine.high %v296_v5, %v296_v5  ;;  %v319_v17 = vcombine.low %v315_v4, %v315_v4 }
  0x8b   :  { %203 = vrot.lane.b32.xlu1 %v195_v32, %s1521_s25  ;;  %v376_v18 = vcombine.high %v372_v13, %v372_v13  ;;  %v356_v19 = vcombine.low %v352_v10, %v352_v10 }
  0x8c   :  { %249 = vrot.lane.b32.xlu0 %v241_v35, %s1522_s26  ;;  %275 = vst [vmem:[#allocation4 + $0x18] sm:$0xf] %v272_v37 }
  0x8d   :  { %v334_v60 = vld [vmem:[#allocation2 + $0x8] sm:$0xf] }
  0x8e   :  { %v371_v61 = vld [vmem:[#allocation2 + $0x8] sm:$0xf] }
  0x8f   :  { %222 = vrot.lane.b32.xlu1 %v1501_v20, %s1518_s1  ;;  %v373_v62 = vmul.f32 %v371_v61, %v1627_v25  ;;  %v1504_v63 = vld [vmem:[#allocation2 + $0x8] ss:$0 sps:$4 sm:$0xff]   ;;  %v409_v20 = vmul.f32 %v1635_v30, %v237_v54 }
  0x90   :  { %97 = vrot.lane.b32.xlu0 %v92_v40, %s1520_s24  ;;  %v1505_v0 = vld [vmem:[#allocation2 + $0x8] ss:$0 sps:$4 sm:$0xff]  }
  0x91   :  { %v295_v1 = vld [vmem:[#allocation2 + $0x8] sm:$0xf]  ;;  %v413_v21 = vcombine.high %v409_v20, %v409_v20 }
  0x92   :  { %v297_v3 = vmul.f32 %v295_v1, %v1620_v23  ;;  %v351_v7 = vld [vmem:[#allocation2 + $0x8] sm:$0xf] }
  0x93   :  { %128 = vrot.lane.b32.xlu1 %v120_v42, %s1523_s27  ;;  %v353_v9 = vmul.f32 %v351_v7, %v161_v41  ;;  %v314_v12 = vld [vmem:[#allocation2 + $0x8] sm:$0xf] }
  0x94   :  { %146 = vrot.lane.b32.xlu0 %v143_v43, %s1517_s0  ;;  %v316_v14 = vmul.f32 %v314_v12, %v1640_v34  ;;  %v408_v22 = vld [vmem:[#allocation2 + $0x8] sm:$0xf] }
  0x95   :  { %v357_v11 = vcombine.low %v353_v9, %v353_v9  ;;  %v410_v23 = vmul.f32 %v408_v22, %v1630_v28 }
  0x96   :  { %v320_v16 = vcombine.low %v316_v14, %v316_v14 }
  0x97   :  { %69 = vrot.lane.b32.xlu1 %v67_v45, %s1519_s23 }
  0x98   :  { %174 = vrot.lane.b32.xlu0 %v166_v47, %s1524_s28 }
  0x9b   :  { %199 = vrot.lane.b32.xlu1 %v194_v48, %s1521_s25 }
  0x9c   :  { %218 = vrot.lane.b32.xlu0 %v67_v45, %s1518_s1 }
  0x9f   :  { %176 = vrot.lane.b32.xlu1 %v171_v51, %s1524_s28 }
  0xa0   :  { %130 = vrot.lane.b32.xlu0 %v125_v52, %s1523_s27 }
  0xa3   :  { %99 = vrot.lane.b32.xlu1 %v96_v53, %s1520_s24 }
  0xa4   :  { %201 = vrot.lane.b32.xlu0 %v198_v55, %s1521_s25 }
  0xa7   :  { %126 = vrot.lane.b32.xlu1 %v124_v57, %s1523_s27 }
  0xa8   :  { %172 = vrot.lane.b32.xlu0 %v170_v58, %s1524_s28 }
  0xab   :  { %247 = vrot.lane.b32.xlu1 %v244_v59, %s1522_s26 }
  0xac   :  { %342 = vrot.lane.b32.xlu0 %v334_v60, %s1517_s0 }
  0xaf   :  { %397 = vrot.lane.b32.xlu1 %v1635_v30, %s1518_s1 }
  0xb0   :  { %284 = vrot.lane.b32.xlu0 %v1635_v30, %s1519_s23 }
  0xb3   :  { %338 = vrot.lane.b32.xlu1 %v1635_v30, %s1517_s0 }
  0xb4   :  { %381 = vrot.lane.b32.xlu0 %v373_v62, %s1521_s25 }
  0xb7   :  { %286 = vrot.lane.b32.xlu1 %v1504_v63, %s1519_s23 }
  0xb8   :  { %399 = vrot.lane.b32.xlu0 %v1505_v0, %s1518_s1 }
  0xbb   :  { %305 = vrot.lane.b32.xlu1 %v297_v3, %s1520_s24 }
  0xbc   :  { %323 = vrot.lane.b32.xlu0 %v315_v4, %s1523_s27 }
  0xbf   :  { %301 = vrot.lane.b32.xlu1 %v296_v5, %s1520_s24 }
  0xc0   :  { %282 = vrot.lane.b32.xlu0 %v393_v6, %s1519_s23 }
  0xc3   :  { %340 = vrot.lane.b32.xlu1 %v337_v8, %s1517_s0 }
  0xc4   :  { %395 = vrot.lane.b32.xlu0 %v393_v6, %s1518_s1 }
  0xc7   :  { %360 = vrot.lane.b32.xlu1 %v352_v10, %s1524_s28 }
  0xc8   :  { %362 = vrot.lane.b32.xlu0 %v357_v11, %s1524_s28 }
  0xcb   :  { %377 = vrot.lane.b32.xlu1 %v372_v13, %s1521_s25 }
  0xcc   :  { %303 = vrot.lane.b32.xlu0 %v300_v15, %s1520_s24 }
  0xcf   :  { %325 = vrot.lane.b32.xlu1 %v320_v16, %s1523_s27 }
  0xd0   :  { %321 = vrot.lane.b32.xlu0 %v319_v17, %s1523_s27 }
  0xd3   :  { %379 = vrot.lane.b32.xlu1 %v376_v18, %s1521_s25 }
  0xd4   :  { %358 = vrot.lane.b32.xlu0 %v356_v19, %s1524_s28 }
  0xd7   :  { %245 = vrot.lane.b32.xlu1 %v240_v56, %s1522_s26 }
  0xd8   :  { %416 = vrot.lane.b32.xlu0 %v413_v21, %s1522_s26 }
  0xdb   :  { %418 = vrot.lane.b32.xlu1 %v410_v23, %s1522_s26 }
  0xdc   :  { %414 = vrot.lane.b32.xlu0 %v409_v20, %s1522_s26 }
  0xf1   :  { %v149_v24 = vpop.permute.xlu1 %148 }
  0xf2   :  { %v221_v25 = vpop.permute.xlu0 %220 }
  0xf5   :  { %v72_v26 = vpop.permute.xlu1 %71 }
  0xf6   :  { %v74_v27 = vpop.permute.xlu0 %73 }
  0xf7   :  { %v77_v29 = vsel %vm75_vm11, %v72_v26, %v74_v27 }
  0xf8   :  { %81 = vst [vmem:[#allocation4 + $0x8] sm:$0xf0] %v77_v29 }
  0xf9   :  { %v145_v30 = vpop.permute.xlu1 %144 }
  0xfa   :  { %v102_v31 = vpop.permute.xlu0 %101 }
  0xfd   :  { %v204_v32 = vpop.permute.xlu1 %203 }
  0xfe   :  { %v250_v33 = vpop.permute.xlu0 %249 }
  0xff   :  { %v428_v63 = vld [vmem:[#allocation4 + $0x8] sm:$0xff] }
 0x101   :  { %v223_v34 = vpop.permute.xlu1 %222 }
 0x102   :  { %v226_v28 = vsel %vm224_vm12, %v221_v25, %v223_v34  ;;  %v98_v35 = vpop.permute.xlu0 %97 }
 0x103   :  { %230 = vst [vmem:[#allocation4 + $0x68] sm:$0xf0] %v226_v28 }
 0x105   :  { %v129_v36 = vpop.permute.xlu1 %128 }
 0x106   :  { %v147_v37 = vpop.permute.xlu0 %146 }
 0x107   :  { %v151_v38 = vsel %vm150_vm13, %v145_v30, %v147_v37  ;;  %v152_v39 = vsel %vm150_vm13, %v147_v37, %v149_v24 }
 0x108   :  { %155 = vst [vmem:[#allocation4 + $0x40] sm:$0xf] %v151_v38  ;;  %156 = vst [vmem:[#allocation4 + $0x48] sm:$0xf] %v152_v39 }
 0x109   :  { %v70_v40 = vpop.permute.xlu1 %69 }
 0x10a   :  { %v76_v41 = vsel %vm75_vm11, %v70_v40, %v72_v26  ;;  %v175_v42 = vpop.permute.xlu0 %174 }
 0x10b   :  { %80 = vst [vmem:[#allocation4] sm:$0xf0] %v76_v41 }
 0x10d   :  { %v200_v43 = vpop.permute.xlu1 %199 }
 0x10e   :  { %v219_v44 = vpop.permute.xlu0 %218 }
 0x10f   :  { %v225_v45 = vsel %vm224_vm12, %v219_v44, %v221_v25 }
 0x110   :  { %229 = vst [vmem:[#allocation4 + $0x60] sm:$0xf0] %v225_v45 }
 0x111   :  { %v177_v46 = vpop.permute.xlu1 %176 }
 0x112   :  { %v180_v47 = vsel %vm178_vm14, %v175_v42, %v177_v46  ;;  %v131_v48 = vpop.permute.xlu0 %130  ;;  %v427_v6 = vld [vmem:[#allocation4] sm:$0xff] }
 0x113   :  { %184 = vst [vmem:[#allocation4 + $0x48] sm:$0xf0] %v180_v47  ;;  %v134_v49 = vsel %vm132_vm15, %v129_v36, %v131_v48 }
 0x114   :  { %138 = vst [vmem:[#allocation4 + $0x28] sm:$0xf0] %v134_v49 }
 0x115   :  { %v100_v50 = vpop.permute.xlu1 %99 }
 0x116   :  { %v104_v51 = vsel %vm103_vm0, %v98_v35, %v100_v50  ;;  %v105_v52 = vsel %vm103_vm0, %v100_v50, %v102_v31  ;;  %v202_v53 = vpop.permute.xlu0 %201 }
 0x117   :  { %108 = vst [vmem:[#allocation4 + $0x20] sm:$0xf] %v104_v51  ;;  %109 = vst [vmem:[#allocation4 + $0x28] sm:$0xf] %v105_v52  ;;  %v206_v54 = vsel %vm2012_vm1, %v200_v43, %v202_v53  ;;  %v207_v55 = vsel %vm2012_vm1, %v202_v53, %v204_v32 }
 0x118   :  { %210 = vst [vmem:[#allocation4 + $0x60] sm:$0xf] %v206_v54  ;;  %211 = vst [vmem:[#allocation4 + $0x68] sm:$0xf] %v207_v55 }
 0x119   :  { %v127_v56 = vpop.permute.xlu1 %126 }
 0x11a   :  { %v133_v57 = vsel %vm132_vm15, %v127_v56, %v129_v36  ;;  %v173_v58 = vpop.permute.xlu0 %172  ;;  %v436_v9 = vld [vmem:[#allocation4 + $0x48] sm:$0xff] }
 0x11b   :  { %137 = vst [vmem:[#allocation4 + $0x20] sm:$0xf0] %v133_v57  ;;  %v179_v59 = vsel %vm178_vm14, %v173_v58, %v175_v42 }
 0x11c   :  { %183 = vst [vmem:[#allocation4 + $0x40] sm:$0xf0] %v179_v59 }
 0x11d   :  { %v1739_v60 = vpop.permute.xlu1 %247 }
 0x11e   :  { %v253_v61 = vsel %vm2011_vm3, %v1739_v60, %v250_v33  ;;  %v343_v62 = vpop.permute.xlu0 %342  ;;  %v432_v0 = vld [vmem:[#allocation4 + $0x28] sm:$0xff] }
 0x11f   :  { %257 = vst [vmem:[#allocation4 + $0x88] sm:$0xf] %v253_v61  ;;  %v1329_v1 = vpack.c.bf16 %v432_v0, %v428_v63  ;;  %v440_v4 = vld [vmem:[#allocation4 + $0x68] sm:$0xff]  ;;  %v439_v14 = vld [vmem:[#allocation4 + $0x60] sm:$0xff] }
 0x120   :  { %v1333_v10 = vpack.c.bf16 %v440_v4, %v436_v9 }
 0x121   :  { %v398_v3 = vpop.permute.xlu1 %397  ;;  %1330 = vmatprep.subr.bf16.mxu0 %v1329_v1 }
 0x122   :  { %v285_v5 = vpop.permute.xlu0 %284  ;;  %v431_v7 = vld [vmem:[#allocation4 + $0x20] sm:$0xff] }
 0x123   :  { %v1331_v8 = vpack.c.bf16 %v431_v7, %v427_v6  ;;  %v435_v11 = vld [vmem:[#allocation4 + $0x40] sm:$0xff] }
 0x124   :  { %v1335_v15 = vpack.c.bf16 %v439_v14, %v435_v11 }
 0x125   :  { %v339_v12 = vpop.permute.xlu1 %338  ;;  %1332 = vmatpush1.bf16.msra.mxu0 %v1331_v8 }
 0x126   :  { %1334 = vmatprep.subr.bf16.mxu0 %v1333_v10  ;;  %v382_v13 = vpop.permute.xlu0 %381  ;;  %v444_v17 = vld [vmem:[#allocation4 + $0x88] sm:$0xf] }
 0x129   :  { %v287_v16 = vpop.permute.xlu1 %286  ;;  %1336 = vmatpush1.bf16.msra.mxu0 %v1335_v15 }
 0x12a   :  { %v289_v18 = vsel %vm75_vm11, %v285_v5, %v287_v16  ;;  %1317 = vmatprep.subr.msk.mxu0 %vm451_vm4, %v444_v17  ;;  %v400_v19 = vpop.permute.xlu0 %399 }
 0x12b   :  { %293 = vst [vmem:[#allocation4 + $0x18] sm:$0xf0] %v289_v18  ;;  %v402_v20 = vsel %vm224_vm12, %v398_v3, %v400_v19 }
 0x12c   :  { %406 = vst [vmem:[#allocation4 + $0x78] sm:$0xf0] %v402_v20 }
 0x12d   :  { %v306_v21 = vpop.permute.xlu1 %305 }
 0x12e   :  { %v324_v22 = vpop.permute.xlu0 %323 }
 0x131   :  { %v302_v23 = vpop.permute.xlu1 %301 }
 0x132   :  { %v283_v24 = vpop.permute.xlu0 %282  ;;  %v430_v50 = vld [vmem:[#allocation4 + $0x18] sm:$0xff] }
 0x133   :  { %v288_v25 = vsel %vm75_vm11, %v283_v24, %v285_v5 }
 0x134   :  { %292 = vst [vmem:[#allocation4 + $0x10] sm:$0xf0] %v288_v25 }
 0x135   :  { %v341_v26 = vpop.permute.xlu1 %340 }
 0x136   :  { %v344_v27 = vsel %vm150_vm13, %v339_v12, %v341_v26  ;;  %v345_v29 = vsel %vm150_vm13, %v341_v26, %v343_v62  ;;  %v396_v30 = vpop.permute.xlu0 %395 }
 0x137   :  { %348 = vst [vmem:[#allocation4 + $0x50] sm:$0xf] %v344_v27  ;;  %349 = vst [vmem:[#allocation4 + $0x58] sm:$0xf] %v345_v29  ;;  %v401_v31 = vsel %vm224_vm12, %v396_v30, %v398_v3  ;;  %v426_v3 = vld [vmem:[%s2003_s3] sm:$0xff]  ;;  %v1525_v27 = vmov 0  }
 0x138   :  { %405 = vst [vmem:[#allocation4 + $0x70] sm:$0xf0] %v401_v31  ;;  %1393 = vset.pattern.permute.xlu0 %v1525_v27  ;;  %1394 = vset.pattern.permute.xlu1 %v1525_v27  ;;  %v640_v29 = vld [vmem:[%s2004_s5] sm:$0xff] }
 0x139   :  { %v361_v32 = vpop.permute.xlu1 %360 }
 0x13a   :  { %v363_v33 = vpop.permute.xlu0 %362 }
 0x13b   :  { %v365_v34 = vsel %vm178_vm14, %v361_v32, %v363_v33  ;;  %v429_v53 = vld [vmem:[#allocation4 + $0x10] sm:$0xff]  ;;  %v627_v33 = vld [vmem:[%s2005_s4] sm:$0xff] }
 0x13c   :  { %369 = vst [vmem:[#allocation4 + $0x58] sm:$0xf0] %v365_v34 }
 0x13d   :  { %v378_v28 = vpop.permute.xlu1 %377 }
 0x13e   :  { %v304_v35 = vpop.permute.xlu0 %303 }
 0x13f   :  { %v307_v36 = vsel %vm103_vm0, %v302_v23, %v304_v35  ;;  %v308_v37 = vsel %vm103_vm0, %v304_v35, %v306_v21  ;;  %v1323_v35 = vld [vmem:[%s2006_s2 + $0x10] sm:$0xff] }
 0x140   :  { %311 = vst [vmem:[#allocation4 + $0x30] sm:$0xf] %v307_v36  ;;  %312 = vst [vmem:[#allocation4 + $0x38] sm:$0xf] %v308_v37  ;;  %v1782_v36 = vld [vmem:[%s2006_s2 + $0x8] sm:$0xff]  ;;  %v1324_v37 = vld [vmem:[%s2006_s2 + $0x18] sm:$0xff] }
 0x141   :  { %v326_v38 = vpop.permute.xlu1 %325 }
 0x142   :  { %v328_v39 = vsel %vm132_vm15, %v324_v22, %v326_v38  ;;  %v322_v40 = vpop.permute.xlu0 %321 }
 0x143   :  { %332 = vst [vmem:[#allocation4 + $0x38] sm:$0xf0] %v328_v39  ;;  %v327_v41 = vsel %vm132_vm15, %v322_v40, %v324_v22  ;;  %v438_v59 = vld [vmem:[#allocation4 + $0x58] sm:$0xff] }
 0x144   :  { %331 = vst [vmem:[#allocation4 + $0x30] sm:$0xf0] %v327_v41 }
 0x145   :  { %v380_v42 = vpop.permute.xlu1 %379 }
 0x146   :  { %v383_v43 = vsel %vm2012_vm1, %v378_v28, %v380_v42  ;;  %v384_v44 = vsel %vm2012_vm1, %v380_v42, %v382_v13  ;;  %v359_v45 = vpop.permute.xlu0 %358 }
 0x147   :  { %387 = vst [vmem:[#allocation4 + $0x70] sm:$0xf] %v383_v43  ;;  %388 = vst [vmem:[#allocation4 + $0x78] sm:$0xf] %v384_v44  ;;  %v364_v46 = vsel %vm178_vm14, %v359_v45, %v361_v32 }
 0x148   :  { %368 = vst [vmem:[#allocation4 + $0x50] sm:$0xf0] %v364_v46 }
 0x149   :  { %v246_v47 = vpop.permute.xlu1 %245 }
 0x14a   :  { %v252_v48 = vsel %vm2011_vm3, %v246_v47, %v1739_v60  ;;  %v417_v49 = vpop.permute.xlu0 %416  ;;  %v434_v51 = vld [vmem:[#allocation4 + $0x38] sm:$0xff] }
 0x14b   :  { %256 = vst [vmem:[#allocation4 + $0x80] sm:$0xf] %v252_v48  ;;  %v1337_v52 = vpack.c.bf16 %v434_v51, %v430_v50  ;;  %v433_v54 = vld [vmem:[#allocation4 + $0x30] sm:$0xff] }
 0x14c   :  { %v1339_v55 = vpack.c.bf16 %v433_v54, %v429_v53 }
 0x14d   :  { %v419_v56 = vpop.permute.xlu1 %418  ;;  %1338 = vmatprep.subr.bf16.mxu1 %v1337_v52 }
 0x14e   :  { %v421_v57 = vsel %vm2011_vm3, %v417_v49, %v419_v56  ;;  %1340 = vmatpush1.bf16.msra.mxu1 %v1339_v55  ;;  %v415_v58 = vpop.permute.xlu0 %414  ;;  %v442_v61 = vld [vmem:[#allocation4 + $0x78] sm:$0xff]  ;;  %v441_v62 = vld [vmem:[#allocation4 + $0x70] sm:$0xff] }
 0x14f   :  { %425 = vst [vmem:[#allocation4 + $0x98] sm:$0xf] %v421_v57  ;;  %v420_v60 = vsel %vm2011_vm3, %v415_v58, %v417_v49  ;;  %v1341_v63 = vpack.c.bf16 %v442_v61, %v438_v59  ;;  %v437_v0 = vld [vmem:[#allocation4 + $0x50] sm:$0xff]  ;;  %v1803_v55 = vld [vmem:[%s2006_s2] sm:$0xff] }
 0x150   :  { %424 = vst [vmem:[#allocation4 + $0x90] sm:$0xf] %v420_v60  ;;  %v1343_v1 = vpack.c.bf16 %v441_v62, %v437_v0 }
 0x151   :  { %1342 = vmatprep.subr.bf16.mxu1 %v1341_v63 }
 0x152   :  { %1344 = vmatpush1.bf16.msra.mxu1 %v1343_v1  ;;  %v443_v4 = vld [vmem:[#allocation4 + $0x80] sm:$0xf] }
 0x153   :  { %1318 = vmatpush1.msk.msra.mxu0 %vm451_vm4, %v443_v4 }
 0x154   :  { %1319 = vmatmul.mubr.msk.f32.vlgmr.msra.gmra.mrb[0].mxu0 %vm447_vm5, %v426_v3 }
 0x155   :  { %1173 = vmatprep.mubr.f32.mxu0 %v1510_v2 }
 0x156   :  { %v446_v5 = vld [vmem:[#allocation4 + $0x98] sm:$0xf] }
 0x157   :  { %1320 = vmatprep.subr.msk.mxu1 %vm451_vm4, %v446_v5  ;;  %v445_v6 = vld [vmem:[#allocation4 + $0x90] sm:$0xf] }
 0x158   :  { %1321 = vmatpush1.msk.msra.mxu1 %vm451_vm4, %v445_v6  ;;  %vm38_vm4 = vcmask 277640  }
 0x159   :  { %1322 = vmatmul.mubr.msk.f32.vlgmr.msra.gmra.mrb[0].mxu1 %vm447_vm5, %v426_v3  ;;  %39 = vst.msk [vmem:[#allocation3 + $0x10] sm:$0xff] %vm38_vm4, %v1510_v2 }
 0x15a   :  { %1244 = vmatprep.mubr.f32.mxu1 %v1510_v2 }
 0x227   :  { %v530_v7 = vpop.f32.mrb[0].mxu0 }
 0x228   :  { %v532_v8 = vpop.f32.mrb[1].mxu0 }
 0x229   :  { %v606_v9 = vadd.f32 %v532_v8, %v530_v7 }
 0x22c   :  { %v601_v10 = vpop.f32.mrb[0].mxu1 }
 0x22d   :  { %v607_v11 = vadd.f32 %v606_v9, %v601_v10  ;;  %v603_v12 = vpop.f32.mrb[1].mxu1 }
 0x22f   :  { %v608_v13 = vadd.f32 %v607_v11, %v603_v12 }
 0x231   :  { %609 = vadd.xlane.f32.xlu1 %v608_v13 }
 0x242   :  { %643 = vperm.xlu1 %1394, %v640_v29  }
 0x246   :  { %710 = vrot.lane.b32.xlu1 %v1323_v35, %s1511_s13 }
 0x2be   :  { %v610_v14 = vpop.xlane.xlu1 %609 }
 0x2bf   :  { %v612_v15 = vmul.f32 0.001953125, %v610_v14 }
 0x2c1   :  { %v613_v16 = vsub.f32 %v530_v7, %v612_v15  ;;  %v614_v17 = vsub.f32 %v532_v8, %v612_v15  ;;  %v615_v18 = vsub.f32 %v601_v10, %v612_v15  ;;  %v616_v19 = vsub.f32 %v603_v12, %v612_v15 }
 0x2c2   :  { %v644_v39 = vpop.permute.xlu1 %643 }
 0x2c3   :  { %v617_v20 = vmul.f32 %v613_v16, %v613_v16  ;;  %v618_v21 = vmul.f32 %v614_v17, %v614_v17  ;;  %v619_v22 = vmul.f32 %v615_v18, %v615_v18  ;;  %v620_v24 = vmul.f32 %v616_v19, %v616_v19 }
 0x2c5   :  { %v621_v23 = vadd.f32 %v618_v21, %v617_v20 }
 0x2c6   :  { %v1811_v56 = vpop.permute.xlu1 %710 }
 0x2c7   :  { %v622_v25 = vadd.f32 %v621_v23, %v619_v22 }
 0x2c9   :  { %v623_v26 = vadd.f32 %v622_v25, %v620_v24 }
 0x2cb   :  { %624 = vadd.xlane.f32.xlu0 %v623_v26 }
 0x358   :  { %v625_v30 = vpop.xlane.xlu0 %624 }
 0x359   :  { %v626_v31 = vmul.f32 0.001953125, %v625_v30 }
 0x35b   :  { %v628_v32 = vadd.f32 1e-05, %v626_v31 }
 0x35d   :  { %1506 = vrsqrt.f32 %v628_v32 }
 0x367   :  { %v1507_v34 = vpop.eup %1506 }
 0x368   :  { %v630_v28 = vmul.f32 %v1507_v34, %v627_v33 }
 0x36a   :  { %633 = vperm.xlu0 %1393, %v630_v28  }
 0x36e   :  { %743 = vrot.lane.b32.xlu0 %v1782_v36, %s1513_s19 }
 0x372   :  { %790 = vrot.lane.b32.xlu0 %v1324_v37, %s1514_s20 }
 0x376   :  { %819 = vrot.lane.b32.xlu0 %v1782_v36, %s1515_s21 }
 0x37a   :  { %866 = vrot.lane.b32.xlu0 %v1324_v37, %s1516_s22 }
 0x3e9   :  { %v634_v38 = vpop.permute.xlu0 %633 }
 0x3ea   :  { %v636_v40 = vmul.f32 %v634_v38, %v613_v16  ;;  %v637_v41 = vmul.f32 %v634_v38, %v614_v17  ;;  %v638_v42 = vmul.f32 %v634_v38, %v615_v18  ;;  %v639_v46 = vmul.f32 %v634_v38, %v616_v19 }
 0x3ec   :  { %v646_v43 = vadd.f32 %v644_v39, %v636_v40  ;;  %v647_v44 = vadd.f32 %v644_v39, %v637_v41  ;;  %v648_v47 = vadd.f32 %v644_v39, %v638_v42  ;;  %v649_v50 = vadd.f32 %v644_v39, %v639_v46 }
 0x3ed   :  { %v744_v3 = vpop.permute.xlu0 %743 }
 0x3ee   :  { %vm650_vm5 = vcmp.ge.f32.partialorder %v646_v43, 0.0  ;;  %v654_v45 = vmul.f32 0.01, %v646_v43  ;;  %v655_v49 = vmul.f32 0.01, %v647_v44  ;;  %vm651_vm3 = vcmp.ge.f32.partialorder %v647_v44, 0.0 }
 0x3ef   :  { %v656_v52 = vmul.f32 0.01, %v648_v47  ;;  %vm652_vm1 = vcmp.ge.f32.partialorder %v648_v47, 0.0  ;;  %v657_v54 = vmul.f32 0.01, %v649_v50  ;;  %vm653_vm4 = vcmp.ge.f32.partialorder %v649_v50, 0.0 }
 0x3f0   :  { %v658_v48 = vsel %vm650_vm5, %v646_v43, %v654_v45  ;;  %v659_v51 = vsel %vm651_vm3, %v647_v44, %v655_v49 }
 0x3f1   :  { %669 = vrot.lane.b32.xlu1 %v658_v48, %s1512_s14  ;;  %v660_v53 = vsel %vm652_vm1, %v648_v47, %v656_v52  ;;  %v661_v2 = vsel %vm653_vm4, %v649_v50, %v657_v54  ;;  %vm677_vm1 = vcmask 1047688   ;;  %v791_v11 = vpop.permute.xlu0 %790 }
 0x3f5   :  { %671 = vrot.lane.b32.xlu1 %v659_v51, %s1512_s14  ;;  %v820_v19 = vpop.permute.xlu0 %819 }
 0x3f9   :  { %892 = vrot.lane.b32.xlu1 %v660_v53, %s1512_s14  ;;  %v867_v52 = vpop.permute.xlu0 %866 }
 0x3fd   :  { %894 = vrot.lane.b32.xlu1 %v661_v2, %s1512_s14 }
 0x401   :  { %712 = vrot.lane.b32.xlu1 %v1324_v37, %s1511_s13 }
 0x405   :  { %741 = vrot.lane.b32.xlu1 %v1803_v55, %s1513_s19 }
 0x409   :  { %788 = vrot.lane.b32.xlu1 %v1323_v35, %s1514_s20 }
 0x40d   :  { %817 = vrot.lane.b32.xlu1 %v1803_v55, %s1515_s21 }
 0x411   :  { %864 = vrot.lane.b32.xlu1 %v1323_v35, %s1516_s22 }
 0x463   :  { %v670_v57 = vpop.permute.xlu1 %669 }
 0x464   :  { %678 = vst.msk [vmem:[#allocation3] sm:$0xff] %vm677_vm1, %v670_v57 }
 0x467   :  { %v672_v58 = vpop.permute.xlu1 %671 }
 0x468   :  { %680 = vst.msk [vmem:[#allocation3 + $0x10] sm:$0xff] %vm36_vm2, %v672_v58  ;;  %v1817_v62 = vsel %vm36_vm2, %v670_v57, %v672_v58 }
 0x46b   :  { %v1814_v59 = vld [vmem:[#allocation3] sm:$0xff]  ;;  %v893_v61 = vpop.permute.xlu1 %892 }
 0x46c   :  { %900 = vst.msk [vmem:[#allocation3] sm:$0xff] %vm677_vm1, %v893_v61  ;;  %v718_v51 = vmul.f32 %v1811_v56, %v1814_v59 }
 0x46f   :  { %v1819_v60 = vld [vmem:[#allocation3 + $0x10] sm:$0xff]  ;;  %v895_v63 = vpop.permute.xlu1 %894 }
 0x470   :  { %v1822_v0 = vsel %vm36_vm2, %v893_v61, %v895_v63  ;;  %v1400_v1 = vpack.i.bf16 %v1819_v60, %v1817_v62  ;;  %902 = vst.msk [vmem:[#allocation3 + $0x10] sm:$0xff] %vm36_vm2, %v895_v63  ;;  %v751_v13 = vmul.f32 %v744_v3, %v1819_v60  ;;  %v798_v18 = vmul.f32 %v791_v11, %v1819_v60 }
 0x471   :  { %v827_v24 = vmul.f32 %v820_v19, %v1819_v60  ;;  %v1450_v31 = vpack.i.bf16 %v1822_v0, %v1814_v59  ;;  %v874_v2 = vmul.f32 %v867_v52, %v1819_v60  ;;  %vm2015_vm2 = vcmask 785408  }
 0x472   :  { %1401 = vrot.lane.b32.xlu0 %v1400_v1, %s1517_s0  ;;  %1396 = vrot.lane.b32.xlu1 %v1400_v1, %s1519_s23 }
 0x473   :  { %v713_v4 = vpop.permute.xlu1 %712  ;;  %v1846_v26 = vld [vmem:[#allocation3] sm:$0xff] }
 0x474   :  { %v714_v5 = vsel %vm88_vm6, %v1811_v56, %v713_v4  ;;  %v720_v6 = vmul.f32 %v1819_v60, %v713_v4  ;;  %v930_v40 = vmul.f32 %v1846_v26, %v1811_v56  ;;  %vm2016_vm6 = vmmov %vm2015_vm2 }
 0x475   :  { %v719_v7 = vmul.f32 %v714_v5, %v1817_v62  ;;  %v931_v47 = vmul.f32 %v1822_v0, %v714_v5 }
 0x476   :  { %1406 = vrot.lane.b32.xlu1 %v1400_v1, %s1518_s1 }
 0x477   :  { %v742_v8 = vpop.permute.xlu1 %741  ;;  %v1410_v9 = vpack.i.bf16 %v720_v6, %v719_v7  ;;  %v929_v22 = vld [vmem:[#allocation3 + $0x10] sm:$0xff]  ;;  %v1475_v53 = vpack.i.bf16 %v931_v47, %v718_v51  ;;  %v684_v7 = vmul.f32 %v1817_v62, %v1782_v36 }
 0x478   :  { %v745_v10 = vsel %vm116_vm7, %v742_v8, %v744_v3  ;;  %v1430_v27 = vpack.i.bf16 %v1846_v26, %v929_v22  ;;  %v951_v30 = vmul.f32 %v1846_v26, %v742_v8  ;;  %v953_v32 = vmul.f32 %v929_v22, %v744_v3  ;;  %vm2017_vm7 = vmmov %vm2015_vm2 }
 0x479   :  { %v750_v12 = vmul.f32 %v745_v10, %v1817_v62  ;;  %1411 = vrot.lane.b32.xlu0 %v1410_v9, %s1520_s24  ;;  %v992_v28 = vmul.f32 %v929_v22, %v791_v11  ;;  %v932_v35 = vmul.f32 %v929_v22, %v713_v4  ;;  %v749_v37 = vmul.f32 %v742_v8, %v1814_v59 }
 0x47a   :  { %v1460_v34 = vpack.i.bf16 %v951_v30, %v953_v32  ;;  %v952_v38 = vmul.f32 %v1822_v0, %v745_v10  ;;  %v1013_v46 = vmul.f32 %v929_v22, %v820_v19  ;;  %v1052_v3 = vmul.f32 %v929_v22, %v867_v52 }
 0x47b   :  { %v789_v14 = vpop.permute.xlu1 %788  ;;  %v1415_v15 = vpack.i.bf16 %v751_v13, %v750_v12  ;;  %v1455_v41 = vpack.i.bf16 %v930_v40, %v932_v35  ;;  %v683_v30 = vmul.f32 %v1814_v59, %v1803_v55  ;;  %v906_v32 = vmul.f32 %v1822_v0, %v1782_v36 }
 0x47c   :  { %v792_v16 = vsel %vm162_vm8, %v789_v14, %v791_v11  ;;  %v990_v33 = vmul.f32 %v1846_v26, %v789_v14  ;;  %v796_v42 = vmul.f32 %v789_v14, %v1814_v59  ;;  %v1480_v45 = vpack.i.bf16 %v952_v38, %v749_v37  ;;  %vm2018_vm8 = vmmov %vm2015_vm2 }
 0x47d   :  { %v797_v17 = vmul.f32 %v792_v16, %v1817_v62  ;;  %1416 = vrot.lane.b32.xlu1 %v1415_v15, %s1523_s27  ;;  %v991_v43 = vmul.f32 %v1822_v0, %v792_v16 }
 0x47e   :  { %v1465_v39 = vpack.i.bf16 %v990_v33, %v992_v28 }
 0x47f   :  { %v818_v20 = vpop.permute.xlu1 %817  ;;  %v1420_v21 = vpack.i.bf16 %v798_v18, %v797_v17  ;;  %v1485_v48 = vpack.i.bf16 %v991_v43, %v796_v42 }
 0x480   :  { %v821_v23 = vsel %vm190_vm9, %v818_v20, %v820_v19  ;;  %v1011_v44 = vmul.f32 %v1846_v26, %v818_v20  ;;  %v825_v57 = vmul.f32 %v818_v20, %v1814_v59  ;;  %vm2019_vm9 = vcmask 769024  }
 0x481   :  { %v826_v25 = vmul.f32 %v821_v23, %v1817_v62  ;;  %1421 = vrot.lane.b32.xlu1 %v1420_v21, %s1524_s28  ;;  %v1012_v58 = vmul.f32 %v1822_v0, %v821_v23 }
 0x482   :  { %v1470_v49 = vpack.i.bf16 %v1011_v44, %v1013_v46 }
 0x483   :  { %v1425_v29 = vpack.i.bf16 %v827_v24, %v826_v25  ;;  %v865_v50 = vpop.permute.xlu1 %864  ;;  %v1495_v63 = vpack.i.bf16 %v1012_v58, %v825_v57 }
 0x484   :  { %v868_v54 = vsel %vm236_vm10, %v865_v50, %v867_v52  ;;  %v872_v1 = vmul.f32 %v865_v50, %v1814_v59  ;;  %v1050_v60 = vmul.f32 %v1846_v26, %v865_v50  ;;  %vm1105_vm10 = vcmask 588800  }
 0x485   :  { %1431 = vrot.lane.b32.xlu1 %v1430_v27, %s1519_s23  ;;  %1426 = vrot.lane.b32.xlu0 %v1425_v29, %s1521_s25  ;;  %v873_v61 = vmul.f32 %v868_v54, %v1817_v62  ;;  %v1051_v56 = vmul.f32 %v1822_v0, %v868_v54 }
 0x489   :  { %1451 = vrot.lane.b32.xlu1 %v1450_v31, %s1518_s1  ;;  %1436 = vrot.lane.b32.xlu0 %v1430_v27, %s1517_s0 }
 0x48d   :  { %1461 = vrot.lane.b32.xlu1 %v1460_v34, %s1523_s27  ;;  %1441 = vrot.lane.b32.xlu0 %v1450_v31, %s1519_s23 }
 0x491   :  { %1466 = vrot.lane.b32.xlu1 %v1465_v39, %s1524_s28  ;;  %1446 = vrot.lane.b32.xlu0 %v1450_v31, %s1517_s0  ;;  %v905_v31 = vmul.f32 %v1846_v26, %v1803_v55 }
 0x495   :  { %1481 = vrot.lane.b32.xlu1 %v1480_v45, %s1523_s27  ;;  %1456 = vrot.lane.b32.xlu0 %v1455_v41, %s1520_s24 }
 0x499   :  { %1486 = vrot.lane.b32.xlu1 %v1485_v48, %s1524_s28  ;;  %1471 = vrot.lane.b32.xlu0 %v1470_v49, %s1521_s25 }
 0x49d   :  { %1491 = vrot.lane.b32.xlu1 %v1430_v27, %s1518_s1  ;;  %1476 = vrot.lane.b32.xlu0 %v1475_v53, %s1520_s24 }
 0x4a1   :  { %882 = vrot.lane.b32.xlu1 %v874_v2, %s1522_s26  ;;  %880 = vrot.lane.b32.xlu0 %v873_v61, %s1522_s26 }
 0x4a5   :  { %1058 = vrot.lane.b32.xlu1 %v1051_v56, %s1522_s26  ;;  %1496 = vrot.lane.b32.xlu0 %v1495_v63, %s1521_s25 }
 0x4a9   :  { %1056 = vrot.lane.b32.xlu1 %v1050_v60, %s1522_s26  ;;  %878 = vrot.lane.b32.xlu0 %v872_v1, %s1522_s26 }
 0x4ad   :  { %1060 = vrot.lane.b32.xlu0 %v1052_v3, %s1522_s26 }
 0x4e4   :  { %v1397_v4 = vpop.permute.xlu1 %1396  ;;  %v1897_v11 = vpop.permute.xlu0 %1401 }
 0x4e5   :  { %v1399_v5 = vunpack.i.h.bf16 %v1397_v4  ;;  %v1398_v6 = vunpack.i.l.bf16 %v1397_v4  ;;  %v1404_v43 = vunpack.i.h.bf16 %v1897_v11  ;;  %v1403_v44 = vunpack.i.l.bf16 %v1897_v11 }
 0x4e7   :  { %v700_v8 = vsel %vm75_vm11, %v1398_v6, %v1399_v5  ;;  %v780_v52 = vsel %vm150_vm13, %v1403_v44, %v1404_v43 }
 0x4e8   :  { %v1345_v9 = vpack.c.bf16 %v700_v8, %v684_v7  ;;  %v1895_v10 = vpop.permute.xlu1 %1406 }
 0x4e9   :  { %v1409_v45 = vunpack.i.h.bf16 %v1895_v10  ;;  %v1408_v46 = vunpack.i.l.bf16 %v1895_v10 }
 0x4ea   :  { %1346 = vmatprep.subr.bf16.mxu0 %v1345_v9 }
 0x4eb   :  { %v1901_v13 = vpop.permute.xlu0 %1411  ;;  %v856_v57 = vsel %vm224_vm12, %v1408_v46, %v1409_v45 }
 0x4ec   :  { %v1414_v20 = vunpack.i.h.bf16 %v1901_v13  ;;  %v1413_v21 = vunpack.i.l.bf16 %v1901_v13 }
 0x4ee   :  { %v731_v41 = vsel %vm103_vm0, %v1413_v21, %v1414_v20 }
 0x4ef   :  { %v1899_v12 = vpop.permute.xlu1 %1416 }
 0x4f0   :  { %v1419_v18 = vunpack.i.h.bf16 %v1899_v12  ;;  %v1418_v19 = vunpack.i.l.bf16 %v1899_v12 }
 0x4f2   :  { %v762_v33 = vsel %vm132_vm15, %v1418_v19, %v1419_v18 }
 0x4f3   :  { %v1903_v14 = vpop.permute.xlu1 %1421  ;;  %v1349_v55 = vpack.c.bf16 %v762_v33, %v731_v41 }
 0x4f4   :  { %v1424_v36 = vunpack.i.h.bf16 %v1903_v14  ;;  %v1423_v0 = vunpack.i.l.bf16 %v1903_v14 }
 0x4f6   :  { %v809_v49 = vsel %vm178_vm14, %v1423_v0, %v1424_v36 }
 0x4f7   :  { %v1905_v15 = vpop.permute.xlu0 %1426  ;;  %v1432_v16 = vpop.permute.xlu1 %1431  ;;  %v1353_v2 = vpack.c.bf16 %v809_v49, %v780_v52 }
 0x4f8   :  { %v1434_v24 = vunpack.i.h.bf16 %v1432_v16  ;;  %v1433_v25 = vunpack.i.l.bf16 %v1432_v16  ;;  %v1429_v47 = vunpack.i.h.bf16 %v1905_v15  ;;  %v1428_v48 = vunpack.i.l.bf16 %v1905_v15  ;;  %v1068_v15 = vld [vmem:[%s2007_s6] sm:$0xff] }
 0x4fa   :  { %v838_v63 = vsel %vm2015_vm2, %v1428_v48, %v1429_v47 }
 0x4fb   :  { %v1907_v17 = vpop.permute.xlu0 %1436  ;;  %v1909_v62 = vpop.permute.xlu1 %1451 }
 0x4fc   :  { %v1438_v58 = vunpack.i.l.bf16 %v1907_v17 }
 0x4ff   :  { %v1442_v22 = vpop.permute.xlu0 %1441  ;;  %v1462_v23 = vpop.permute.xlu1 %1461 }
 0x500   :  { %v1444_v27 = vunpack.i.h.bf16 %v1442_v22  ;;  %v1443_v29 = vunpack.i.l.bf16 %v1442_v22  ;;  %v1464_v61 = vunpack.i.h.bf16 %v1462_v23  ;;  %v1463_v1 = vunpack.i.l.bf16 %v1462_v23 }
 0x502   :  { %v699_v34 = vsel %vm75_vm11, %v1443_v29, %v1398_v6  ;;  %v921_v28 = vsel %vm75_vm11, %v1434_v24, %v1444_v27  ;;  %v922_v35 = vsel %vm75_vm11, %v1444_v27, %v1433_v25  ;;  %vm2020_vm11 = vmmov %vm2019_vm9 }
 0x503   :  { %v1347_v37 = vpack.c.bf16 %v699_v34, %v683_v30  ;;  %v1363_v38 = vpack.c.bf16 %v921_v28, %v905_v31  ;;  %v1925_v39 = vpop.permute.xlu0 %1446  ;;  %v1467_v40 = vpop.permute.xlu1 %1466  ;;  %v1361_v59 = vpack.c.bf16 %v922_v35, %v906_v32  ;;  %v1453_v32 = vunpack.i.l.bf16 %v1909_v62 }
 0x504   :  { %v1449_v60 = vunpack.i.h.bf16 %v1925_v39  ;;  %v1468_v3 = vunpack.i.l.bf16 %v1467_v40  ;;  %v1448_v12 = vunpack.i.l.bf16 %v1925_v39  ;;  %v1469_v24 = vunpack.i.h.bf16 %v1467_v40 }
 0x505   :  { %1348 = vmatpush1.bf16.msra.mxu0 %v1347_v37  ;;  %1362 = vmatprep.subr.bf16.mxu1 %v1361_v59  ;;  %v1357_v39 = vpack.c.bf16 %v856_v57, %v838_v63 }
 0x506   :  { %1350 = vmatprep.subr.bf16.mxu0 %v1349_v55  ;;  %1364 = vmatpush1.bf16.msra.mxu1 %v1363_v38  ;;  %v779_v38 = vsel %vm150_vm13, %v1448_v12, %v1403_v44  ;;  %v855_v44 = vsel %vm224_vm12, %v1453_v32, %v1408_v46 }
 0x507   :  { %v1457_v26 = vpop.permute.xlu0 %1456  ;;  %v1482_v42 = vpop.permute.xlu1 %1481 }
 0x508   :  { %v1484_v53 = vunpack.i.h.bf16 %v1482_v42  ;;  %v1483_v54 = vunpack.i.l.bf16 %v1482_v42  ;;  %v1459_v4 = vunpack.i.h.bf16 %v1457_v26  ;;  %v1458_v7 = vunpack.i.l.bf16 %v1457_v26 }
 0x50a   :  { %v761_v13 = vsel %vm132_vm15, %v1483_v54, %v1418_v19  ;;  %v963_v14 = vsel %vm132_vm15, %v1464_v61, %v1484_v53  ;;  %v964_v16 = vsel %vm132_vm15, %v1484_v53, %v1463_v1  ;;  %v1439_v19 = vunpack.i.h.bf16 %v1907_v17 }
 0x50b   :  { %v1937_v50 = vpop.permute.xlu0 %1471  ;;  %v1487_v51 = vpop.permute.xlu1 %1486  ;;  %v1454_v17 = vunpack.i.h.bf16 %v1909_v62 }
 0x50c   :  { %v1489_v56 = vunpack.i.h.bf16 %v1487_v51  ;;  %v1488_v8 = vunpack.i.l.bf16 %v1487_v51  ;;  %v981_v40 = vsel %vm150_vm13, %v1439_v19, %v1449_v60  ;;  %v1474_v59 = vunpack.i.h.bf16 %v1937_v50 }
 0x50d   :  { %v1473_v36 = vunpack.i.l.bf16 %v1937_v50 }
 0x50e   :  { %v1003_v23 = vsel %vm178_vm14, %v1489_v56, %v1468_v3  ;;  %v808_v33 = vsel %vm178_vm14, %v1488_v8, %v1423_v0  ;;  %v1002_v34 = vsel %vm178_vm14, %v1469_v24, %v1489_v56 }
 0x50f   :  { %v1477_v5 = vpop.permute.xlu0 %1476  ;;  %v1492_v6 = vpop.permute.xlu1 %1491  ;;  %v1355_v41 = vpack.c.bf16 %v808_v33, %v779_v38  ;;  %v1371_v0 = vpack.c.bf16 %v1002_v34, %v981_v40 }
 0x510   :  { %v1479_v9 = vunpack.i.h.bf16 %v1477_v5  ;;  %v1478_v11 = vunpack.i.l.bf16 %v1477_v5  ;;  %v1494_v28 = vunpack.i.h.bf16 %v1492_v6  ;;  %v1493_v35 = vunpack.i.l.bf16 %v1492_v6 }
 0x512   :  { %v730_v18 = vsel %vm103_vm0, %v1478_v11, %v1413_v21  ;;  %v942_v20 = vsel %vm103_vm0, %v1459_v4, %v1479_v9  ;;  %v943_v22 = vsel %vm103_vm0, %v1479_v9, %v1458_v7  ;;  %v982_v21 = vsel %vm150_vm13, %v1449_v60, %v1438_v58  ;;  %vm2022_vm13 = vmmov %vm2019_vm9 }
 0x513   :  { %v1351_v25 = vpack.c.bf16 %v761_v13, %v730_v18  ;;  %v1367_v27 = vpack.c.bf16 %v963_v14, %v942_v20  ;;  %v881_v29 = vpop.permute.xlu0 %880  ;;  %v883_v30 = vpop.permute.xlu1 %882  ;;  %v1365_v31 = vpack.c.bf16 %v964_v16, %v943_v22  ;;  %v1369_v37 = vpack.c.bf16 %v1003_v23, %v982_v21  ;;  %v1284_v23 = vld [vmem:[%s2008_s8] sm:$0xff] }
 0x514   :  { %v1041_v45 = vsel %vm224_vm12, %v1494_v28, %v1454_v17  ;;  %v1042_v62 = vsel %vm224_vm12, %v1454_v17, %v1493_v35  ;;  %v885_v46 = vsel %vm2019_vm9, %v881_v29, %v883_v30  ;;  %vm2021_vm12 = vmmov %vm2019_vm9 }
 0x515   :  { %1352 = vmatpush1.bf16.msra.mxu0 %v1351_v25  ;;  %1366 = vmatprep.subr.bf16.mxu1 %v1365_v31 }
 0x516   :  { %1354 = vmatprep.subr.bf16.mxu0 %v1353_v2  ;;  %1368 = vmatpush1.bf16.msra.mxu1 %v1367_v27 }
 0x517   :  { %v1497_v55 = vpop.permute.xlu0 %1496  ;;  %1370 = vmatprep.subr.bf16.mxu1 %v1369_v37  ;;  %v1059_v43 = vpop.permute.xlu1 %1058 }
 0x518   :  { %v1499_v26 = vunpack.i.h.bf16 %v1497_v55  ;;  %v1498_v42 = vunpack.i.l.bf16 %v1497_v55 }
 0x519   :  { %1356 = vmatpush1.bf16.msra.mxu0 %v1355_v41 }
 0x51a   :  { %v1023_v47 = vsel %vm2016_vm6, %v1474_v59, %v1499_v26  ;;  %v837_v49 = vsel %vm2017_vm7, %v1498_v42, %v1428_v48  ;;  %1358 = vmatprep.subr.bf16.mxu0 %v1357_v39  ;;  %1372 = vmatpush1.bf16.msra.mxu1 %v1371_v0  ;;  %v1024_v50 = vsel %vm2018_vm8, %v1499_v26, %v1473_v36 }
 0x51b   :  { %v1359_v51 = vpack.c.bf16 %v855_v44, %v837_v49  ;;  %v1375_v52 = vpack.c.bf16 %v1041_v45, %v1023_v47  ;;  %v879_v10 = vpop.permute.xlu0 %878  ;;  %v1373_v53 = vpack.c.bf16 %v1042_v62, %v1024_v50  ;;  %v1057_v54 = vpop.permute.xlu1 %1056 }
 0x51c   :  { %v884_v48 = vsel %vm2020_vm11, %v879_v10, %v881_v29  ;;  %v1062_v58 = vsel %vm2022_vm13, %v1057_v54, %v1059_v43  ;;  %v1271_v29 = vld [vmem:[%s2009_s7] sm:$0xff] }
 0x51d   :  { %1360 = vmatpush1.bf16.msra.mxu0 %v1359_v51  ;;  %1374 = vmatprep.subr.bf16.mxu1 %v1373_v53 }
 0x51e   :  { %1125 = vmatprep.subr.mxu0 %v885_v46  ;;  %1376 = vmatpush1.bf16.msra.mxu1 %v1375_v52 }
 0x51f   :  { %v1061_v2 = vpop.permute.xlu0 %1060 }
 0x520   :  { %v1063_v57 = vsel %vm2021_vm12, %v1059_v43, %v1061_v2 }
 0x521   :  { %1126 = vmatpush1.msra.mxu0 %v884_v48  ;;  %1196 = vmatprep.subr.mxu1 %v1063_v57 }
 0x522   :  { %1325 = vmatmul.mubr.msk.f32.vlgmr.msra.gmra.mrb[2].mxu0 %vm1105_vm10, %v1068_v15  ;;  %1197 = vmatpush1.msra.mxu1 %v1062_v58 }
 0x523   :  { %1326 = vmatmul.mubr.msk.f32.vlgmr.msra.gmra.mrb[2].mxu1 %vm1105_vm10, %v1068_v15 }
 0x5f5   :  { %v1175_v61 = vpop.f32.mrb[2].mxu0 }
 0x5f6   :  { %v1177_v56 = vpop.f32.mrb[3].mxu0  ;;  %v1246_v63 = vpop.f32.mrb[2].mxu1 }
 0x5f7   :  { %v1251_v1 = vadd.f32 %v1177_v56, %v1175_v61  ;;  %v1248_v60 = vpop.f32.mrb[3].mxu1 }
 0x5f9   :  { %v1252_v3 = vadd.f32 %v1251_v1, %v1246_v63 }
 0x5fb   :  { %v1253_v4 = vadd.f32 %v1252_v3, %v1248_v60 }
 0x5fd   :  { %1254 = vadd.xlane.f32.xlu0 %v1253_v4 }
 0x68a   :  { %v1255_v5 = vpop.xlane.xlu0 %1254 }
 0x68b   :  { %v1256_v6 = vmul.f32 0.001953125, %v1255_v5 }
 0x68d   :  { %v1257_v7 = vsub.f32 %v1175_v61, %v1256_v6  ;;  %v1258_v8 = vsub.f32 %v1177_v56, %v1256_v6  ;;  %v1259_v9 = vsub.f32 %v1246_v63, %v1256_v6  ;;  %v1260_v11 = vsub.f32 %v1248_v60, %v1256_v6 }
 0x68f   :  { %v1261_v12 = vmul.f32 %v1257_v7, %v1257_v7  ;;  %v1262_v13 = vmul.f32 %v1258_v8, %v1258_v8  ;;  %v1263_v14 = vmul.f32 %v1259_v9, %v1259_v9  ;;  %v1264_v18 = vmul.f32 %v1260_v11, %v1260_v11 }
 0x691   :  { %v1265_v16 = vadd.f32 %v1262_v13, %v1261_v12 }
 0x693   :  { %v1266_v20 = vadd.f32 %v1265_v16, %v1263_v14 }
 0x695   :  { %v1267_v22 = vadd.f32 %v1266_v20, %v1264_v18 }
 0x697   :  { %1268 = vadd.xlane.f32.xlu1 %v1267_v22 }
 0x6a8   :  { %1287 = vperm.xlu1 %1394, %v1284_v23  }
 0x724   :  { %v1269_v24 = vpop.xlane.xlu1 %1268 }
 0x725   :  { %v1270_v25 = vmul.f32 0.001953125, %v1269_v24 }
 0x727   :  { %v1272_v27 = vadd.f32 1e-05, %v1270_v25 }
 0x728   :  { %v1288_v28 = vpop.permute.xlu1 %1287 }
 0x729   :  { %1508 = vrsqrt.f32 %v1272_v27 }
 0x733   :  { %v1509_v30 = vpop.eup %1508 }
 0x734   :  { %v1274_v31 = vmul.f32 %v1509_v30, %v1271_v29 }
 0x736   :  { %1277 = vperm.xlu0 %1393, %v1274_v31  }
 0x7b5   :  { %v1278_v19 = vpop.permute.xlu0 %1277 }
 0x7b6   :  { %v1280_v32 = vmul.f32 %v1278_v19, %v1257_v7  ;;  %v1281_v33 = vmul.f32 %v1278_v19, %v1258_v8  ;;  %v1282_v21 = vmul.f32 %v1278_v19, %v1259_v9  ;;  %v1283_v34 = vmul.f32 %v1278_v19, %v1260_v11 }
 0x7b8   :  { %v1290_v35 = vadd.f32 %v1288_v28, %v1280_v32  ;;  %v1291_v37 = vadd.f32 %v1288_v28, %v1281_v33  ;;  %v1292_v38 = vadd.f32 %v1288_v28, %v1282_v21  ;;  %v1293_v39 = vadd.f32 %v1288_v28, %v1283_v34 }
 0x7ba   :  { %vm1294_vm14 = vcmp.ge.f32.partialorder %v1290_v35, 0.0  ;;  %vm1295_vm15 = vcmp.ge.f32.partialorder %v1291_v37, 0.0  ;;  %vm1296_vm0 = vcmp.ge.f32.partialorder %v1292_v38, 0.0  ;;  %vm1297_vm3 = vcmp.ge.f32.partialorder %v1293_v39, 0.0 }
 0x7bb   :  { %v1298_v17 = vmul.f32 0.01, %v1290_v35  ;;  %v1299_v40 = vmul.f32 0.01, %v1291_v37  ;;  %v1300_v59 = vmul.f32 0.01, %v1292_v38 }
 0x7bc   :  { %v1301_v41 = vmul.f32 0.01, %v1293_v39 }
 0x7bd   :  { %v1302_v55 = vsel %vm1294_vm14, %v1290_v35, %v1298_v17  ;;  %v1303_v36 = vsel %vm1295_vm15, %v1291_v37, %v1299_v40  ;;  %v1304_v0 = vsel %vm1296_vm0, %v1292_v38, %v1300_v59 }
 0x7be   :  { %v1305_v26 = vsel %vm1297_vm3, %v1293_v39, %v1301_v41  ;;  %1306 = vst [vmem:[%s2010_s9] sm:$0xff] %v1302_v55  ;;  %1307 = vst [vmem:[%s2010_s9 + $0x8] sm:$0xff] %v1303_v36 }
 0x7bf   :  { %1327 = vst [vmem:[%s2010_s9 + $0x10] sm:$0xff] %v1304_v0  ;;  %1328 = vst [vmem:[%s2010_s9 + $0x18] sm:$0xff] %v1305_v26 }

</bundles_post_ra>
